<compile_context>
chip_gen: v5e
topology: v5e:2x2
jax: 0.10.0
libtpu: 0.0.40
codegen_flags: <defaults>
</compile_context>

<pallas_src>
import jax
import jax.numpy as jnp
from jax.experimental import pallas as pl
from jax.experimental.pallas import tpu as pltpu


def _mlp_kernel(x_ref, w1_ref, b1_ref, w2_ref, b2_ref, w3_ref, b3_ref, o_ref):
    """One batch tile.  Activations are (features, TILE_B): batch on lanes.

    x_ref : (F, TILE_B)  bf16      w1_ref: (H1, F)  bf16   b1_ref: (H1, 1) f32
    w2_ref: (H2, H1)     bf16      b2_ref: (H2, 1)  f32
    w3_ref: (H2, 1)      f32       b3_ref: (1, 1)   f32 (SMEM scalar)
    o_ref : (1, TILE_B)  f32
    """
    # fc1 + ReLU  (MXU: bf16 x bf16 -> f32 accumulate)
    h1 = jnp.dot(w1_ref[...], x_ref[...], preferred_element_type=jnp.float32)
    h1 = jnp.maximum(h1 + b1_ref[...], 0.0).astype(jnp.bfloat16)

    # fc2 + ReLU  (MXU)
    h2 = jnp.dot(w2_ref[...], h1, preferred_element_type=jnp.float32)
    h2 = jnp.maximum(h2 + b2_ref[...], 0.0)

    # fc3 + ReLU  (VPU multiply + XLU sublane reduce; avoids an N=1 MXU pass)
    h3 = jnp.sum(h2 * w3_ref[...], axis=0, keepdims=True) + b3_ref[0, 0]
    o_ref[...] = jnp.maximum(h3, 0.0).astype(o_ref.dtype)


def _round_up(n, m):
    return ((n + m - 1) // m) * m


def _zero_pad(a, shape):
    out = jnp.zeros(shape, a.dtype)
    return out.at[tuple(slice(0, s) for s in a.shape)].set(a)


def init_params(key, n_features):
    """PyTorch-layout params (w: (out, in), b: (out,)) mirroring nn.Linear's
    U(-1/sqrt(fan_in), 1/sqrt(fan_in)) init."""
    def linear(k, fan_in, fan_out):
        kw, kb = jax.random.split(k)
        bound = 1.0 / jnp.sqrt(jnp.float32(fan_in))
        w = jax.random.uniform(kw, (fan_out, fan_in), jnp.float32, -bound, bound)
        b = jax.random.uniform(kb, (fan_out,), jnp.float32, -bound, bound)
        return w, b

    k1, k2, k3 = jax.random.split(key, 3)
    w1, b1 = linear(k1, n_features, 1000)
    w2, b2 = linear(k2, 1000, 100)
    w3, b3 = linear(k3, 100, 1)
    return {"w1": w1, "b1": b1, "w2": w2, "b2": b2, "w3": w3, "b3": b3}


def prepare_params(params):
    """Pad hidden dims to lane multiples (1000->1024, 100->128), cast matmul
    weights to bf16, and lay biases / fc3 weight out as f32 columns."""
    f = params["w1"].shape[1]
    h1p = _round_up(params["w1"].shape[0], 128)   # 1000 -> 1024
    h2p = _round_up(params["w2"].shape[0], 128)   # 100  -> 128
    return {
        "w1": _zero_pad(params["w1"], (h1p, f)).astype(jnp.bfloat16),
        "b1": _zero_pad(params["b1"], (h1p,)).reshape(h1p, 1),
        "w2": _zero_pad(params["w2"], (h2p, h1p)).astype(jnp.bfloat16),
        "b2": _zero_pad(params["b2"], (h2p,)).reshape(h2p, 1),
        "w3": _zero_pad(params["w3"][0], (h2p,)).reshape(h2p, 1),   # f32 column
        "b3": params["b3"].reshape(1, 1),                           # SMEM scalar
    }


def nhlnet_wide_forward(x, params, *, tile_b=128):
    """x: (B, n_features) float32; params: PyTorch-layout dict.  Returns (B, 1) f32.

    tile_b must be a multiple of 128; 128-256 is a good default, use 512+ for
    very large batches (weights stay VMEM-resident either way).
    """
    assert tile_b % 128 == 0, "tile_b must be a multiple of the 128-lane width"
    B, F = x.shape
    kp = prepare_params(params)
    H1 = kp["w1"].shape[0]
    H2 = kp["w2"].shape[0]

    nb = pl.cdiv(B, tile_b)
    b_pad = nb * tile_b

    # (B, F) f32 -> (F, b_pad) bf16: batch on the lane axis, zero-padded tail.
    x_t = jnp.zeros((F, b_pad), jnp.bfloat16).at[:, :B].set(
        x.astype(jnp.bfloat16).T)

    out = pl.pallas_call(
        _mlp_kernel,
        out_shape=jax.ShapeDtypeStruct((1, b_pad), jnp.float32),
        grid_spec=pltpu.PrefetchScalarGridSpec(
            num_scalar_prefetch=0,
            grid=(nb,),
            in_specs=[
                pl.BlockSpec((F, tile_b), lambda i: (0, i)),   # x tile (pipelined)
                pl.BlockSpec((H1, F), lambda i: (0, 0)),       # W1 (VMEM-resident)
                pl.BlockSpec((H1, 1), lambda i: (0, 0)),       # b1 (resident)
                pl.BlockSpec((H2, H1), lambda i: (0, 0)),      # W2 (resident)
                pl.BlockSpec((H2, 1), lambda i: (0, 0)),       # b2 (resident)
                pl.BlockSpec((H2, 1), lambda i: (0, 0)),       # w3 (resident)
                pl.BlockSpec(memory_space=pltpu.MemorySpace.SMEM),  # b3 scalar
            ],
            out_specs=pl.BlockSpec((1, tile_b), lambda i: (0, i)),
        ),
        compiler_params=pltpu.CompilerParams(
            dimension_semantics=("parallel",)),
    )(x_t, kp["w1"], kp["b1"], kp["w2"], kp["b2"], kp["w3"], kp["b3"])

    return out[0, :B][:, None]


def _reference_forward(x, p):
    """Pure-JAX NHLnetWide.forward with the kernel's precision policy
    (bf16 matmul operands for fc1/fc2, f32 accumulation, f32 fc3)."""
    def mm_bf16(a, w):
        return jnp.dot(a.astype(jnp.bfloat16), w.T.astype(jnp.bfloat16),
                       preferred_element_type=jnp.float32)
    h = jnp.maximum(mm_bf16(x, p["w1"]) + p["b1"], 0.0)
    h = jnp.maximum(mm_bf16(h, p["w2"]) + p["b2"], 0.0)
    h = jnp.maximum(h @ p["w3"].T + p["b3"], 0.0)
    return h


if __name__ == "__main__":
    key = jax.random.PRNGKey(0)
    k_x, k_p = jax.random.split(key)

    batch, n_features = 200, 32   # pads to 256 lanes -> 2 batch tiles of 128
    x = jax.random.normal(k_x, (batch, n_features), dtype=jnp.float32)
    params = init_params(k_p, n_features)

    out = nhlnet_wide_forward(x, params, tile_b=128)
    out = jax.block_until_ready(out)

    ref = _reference_forward(x, params)
    assert out.shape == (batch, 1), out.shape
    assert jnp.allclose(out, ref, atol=5e-3, rtol=5e-3), "mismatch vs JAX reference"

    print("KERNEL_OK")
</pallas_src>

<mosaic_0001>
module attributes {stable_mosaic.version = 11 : i64} {
  func.func @_mlp_kernel(%arg0: i32, %arg1: memref<32x128xbf16, #tpu.memory_space<vmem>>, %arg2: memref<1024x32xbf16, #tpu.memory_space<vmem>>, %arg3: memref<1024x1xf32, #tpu.memory_space<vmem>>, %arg4: memref<128x1024xbf16, #tpu.memory_space<vmem>>, %arg5: memref<128x1xf32, #tpu.memory_space<vmem>>, %arg6: memref<128x1xf32, #tpu.memory_space<vmem>>, %arg7: memref<1x1xf32, #tpu.memory_space<smem>>, %arg8: memref<1x128xf32, #tpu.memory_space<vmem>>) attributes {dimension_semantics = [#tpu.dimension_semantics<parallel>], iteration_bounds = array<i64: 2>, scalar_prefetch = 0 : i64, scratch_operands = 0 : i64, tpu.core_type = #tpu.core_type<tc>, window_params = [{transform_indices = @transform_0, window_bounds = array<i64: 32, 128>}, {pipeline_mode = #tpu.pipeline_mode<synchronous>, transform_indices = @transform_1, window_bounds = array<i64: 1024, 32>}, {pipeline_mode = #tpu.pipeline_mode<synchronous>, transform_indices = @transform_2, window_bounds = array<i64: 1024, 1>}, {pipeline_mode = #tpu.pipeline_mode<synchronous>, transform_indices = @transform_3, window_bounds = array<i64: 128, 1024>}, {pipeline_mode = #tpu.pipeline_mode<synchronous>, transform_indices = @transform_4, window_bounds = array<i64: 128, 1>}, {pipeline_mode = #tpu.pipeline_mode<synchronous>, transform_indices = @transform_5, window_bounds = array<i64: 128, 1>}, {transform_indices = @transform_6, window_bounds = array<i64: 1, 1>}, {transform_indices = @transform_7, window_bounds = array<i64: 1, 128>}]} {
    %c0 = arith.constant 0 : index
    %c0_0 = arith.constant 0 : index
    %0 = vector.load %arg2[%c0, %c0_0] : memref<1024x32xbf16, #tpu.memory_space<vmem>>, vector<1024x32xbf16>
    %c0_1 = arith.constant 0 : index
    %c0_2 = arith.constant 0 : index
    %1 = vector.load %arg1[%c0_1, %c0_2] : memref<32x128xbf16, #tpu.memory_space<vmem>>, vector<32x128xbf16>
    %cst = arith.constant dense<0.000000e+00> : vector<1024x128xf32>
    %2 = tpu.matmul %0, %1, %cst {dimension_numbers = #tpu.dot_dimension_numbers<[1], [0], [0], [1], [0, 0, 1, 1], [], []>} : vector<1024x32xbf16>, vector<32x128xbf16>, vector<1024x128xf32> -> vector<1024x128xf32>
    %c0_3 = arith.constant 0 : index
    %c0_4 = arith.constant 0 : index
    %3 = vector.load %arg3[%c0_3, %c0_4] : memref<1024x1xf32, #tpu.memory_space<vmem>>, vector<1024x1xf32>
    %4 = vector.broadcast %3 : vector<1024x1xf32> to vector<1024x128xf32>
    %5 = arith.addf %2, %4 : vector<1024x128xf32>
    %cst_5 = arith.constant 0.000000e+00 : f32
    %6 = vector.broadcast %cst_5 : f32 to vector<1024x128xf32>
    %7 = arith.maximumf %5, %6 : vector<1024x128xf32>
    %8 = arith.truncf %7 : vector<1024x128xf32> to vector<1024x128xbf16>
    %c0_6 = arith.constant 0 : index
    %c0_7 = arith.constant 0 : index
    %9 = vector.load %arg4[%c0_6, %c0_7] : memref<128x1024xbf16, #tpu.memory_space<vmem>>, vector<128x1024xbf16>
    %cst_8 = arith.constant dense<0.000000e+00> : vector<128x128xf32>
    %10 = tpu.matmul %9, %8, %cst_8 {dimension_numbers = #tpu.dot_dimension_numbers<[1], [0], [0], [1], [0, 0, 1, 1], [], []>} : vector<128x1024xbf16>, vector<1024x128xbf16>, vector<128x128xf32> -> vector<128x128xf32>
    %c0_9 = arith.constant 0 : index
    %c0_10 = arith.constant 0 : index
    %11 = vector.load %arg5[%c0_9, %c0_10] : memref<128x1xf32, #tpu.memory_space<vmem>>, vector<128x1xf32>
    %12 = vector.broadcast %11 : vector<128x1xf32> to vector<128x128xf32>
    %13 = arith.addf %10, %12 : vector<128x128xf32>
    %cst_11 = arith.constant 0.000000e+00 : f32
    %14 = vector.broadcast %cst_11 : f32 to vector<128x128xf32>
    %15 = arith.maximumf %13, %14 : vector<128x128xf32>
    %c0_12 = arith.constant 0 : index
    %c0_13 = arith.constant 0 : index
    %16 = vector.load %arg6[%c0_12, %c0_13] : memref<128x1xf32, #tpu.memory_space<vmem>>, vector<128x1xf32>
    %17 = vector.broadcast %16 : vector<128x1xf32> to vector<128x128xf32>
    %18 = arith.mulf %15, %17 : vector<128x128xf32>
    %cst_14 = arith.constant dense<0.000000e+00> : vector<128xf32>
    %19 = vector.multi_reduction <add>, %18, %cst_14 [0] : vector<128x128xf32> to vector<128xf32>
    %20 = vector.shape_cast %19 : vector<128xf32> to vector<1x128xf32>
    %c0_15 = arith.constant 0 : index
    %c0_16 = arith.constant 0 : index
    %21 = memref.load %arg7[%c0_15, %c0_16] : memref<1x1xf32, #tpu.memory_space<smem>>
    %22 = vector.broadcast %21 : f32 to vector<1x128xf32>
    %23 = arith.addf %20, %22 : vector<1x128xf32>
    %cst_17 = arith.constant 0.000000e+00 : f32
    %24 = vector.broadcast %cst_17 : f32 to vector<1x128xf32>
    %25 = arith.maximumf %23, %24 : vector<1x128xf32>
    %c0_18 = arith.constant 0 : index
    %c0_19 = arith.constant 0 : index
    %26 = vector.load %arg8[%c0_18, %c0_19] : memref<1x128xf32, #tpu.memory_space<vmem>>, vector<1x128xf32>
    tpu.vector_store %arg8[%c0_18, %c0_19], %25 {strides = array<i32>} : memref<1x128xf32, #tpu.memory_space<vmem>>, vector<1x128xf32>,
    return
  }
  func.func @transform_0(%arg0: i32) -> (i32, i32) {
    %c0_i32 = arith.constant 0 : i32
    %c0_i32_0 = arith.constant 0 : i32
    return %c0_i32, %arg0 : i32, i32
  }
  func.func @transform_1(%arg0: i32) -> (i32, i32) {
    %c0_i32 = arith.constant 0 : i32
    %c0_i32_0 = arith.constant 0 : i32
    %c0_i32_1 = arith.constant 0 : i32
    return %c0_i32, %c0_i32_0 : i32, i32
  }
  func.func @transform_2(%arg0: i32) -> (i32, i32) {
    %c0_i32 = arith.constant 0 : i32
    %c0_i32_0 = arith.constant 0 : i32
    %c0_i32_1 = arith.constant 0 : i32
    return %c0_i32, %c0_i32_0 : i32, i32
  }
  func.func @transform_3(%arg0: i32) -> (i32, i32) {
    %c0_i32 = arith.constant 0 : i32
    %c0_i32_0 = arith.constant 0 : i32
    %c0_i32_1 = arith.constant 0 : i32
    return %c0_i32, %c0_i32_0 : i32, i32
  }
  func.func @transform_4(%arg0: i32) -> (i32, i32) {
    %c0_i32 = arith.constant 0 : i32
    %c0_i32_0 = arith.constant 0 : i32
    %c0_i32_1 = arith.constant 0 : i32
    return %c0_i32, %c0_i32_0 : i32, i32
  }
  func.func @transform_5(%arg0: i32) -> (i32, i32) {
    %c0_i32 = arith.constant 0 : i32
    %c0_i32_0 = arith.constant 0 : i32
    %c0_i32_1 = arith.constant 0 : i32
    return %c0_i32, %c0_i32_0 : i32, i32
  }
  func.func @transform_6(%arg0: i32) -> (i32, i32) {
    %c0_i32 = arith.constant 0 : i32
    %c0_i32_0 = arith.constant 0 : i32
    %c0_i32_1 = arith.constant 0 : i32
    return %c0_i32, %c0_i32_0 : i32, i32
  }
  func.func @transform_7(%arg0: i32) -> (i32, i32) {
    %c0_i32 = arith.constant 0 : i32
    %c0_i32_0 = arith.constant 0 : i32
    return %c0_i32, %arg0 : i32, i32
  }
}

</mosaic_0001>

<bundles_post_ra>
// kernel: tpu_custom_call.1
= control target key start
LH: loop header
LB: loop body
LE: loop exit
PB: predicated region body
PF: predicated region fallthrough
CT: control target
= control target key end

     0   :  { %s6281_s0 = inlined_call_operand.vmem [shape: bf16[32,256], index: 0, kind: input, shape index: {}]   ;;  %s6282_s1 = inlined_call_operand.vmem [shape: bf16[1024,32], index: 1, kind: input, shape index: {}]   ;;  %s6283_s2 = inlined_call_operand.vmem [shape: f32[1024,1], index: 2, kind: input, shape index: {}]   ;;  %s6284_s3 = inlined_call_operand.vmem [shape: bf16[128,1024], index: 3, kind: input, shape index: {}]   ;;  %s6285_s4 = inlined_call_operand.vmem [shape: f32[128,1], index: 4, kind: input, shape index: {}]   ;;  %s6286_s5 = inlined_call_operand.vmem [shape: f32[128,1], index: 5, kind: input, shape index: {}]   ;;  %s6287_s6 = inlined_call_operand.<no memory space> [shape: f32[1,1], index: 6, kind: input, shape index: {}]   ;;  %s6288_s7 = inlined_call_operand.hbm [shape: f32[1,256], index: 7, kind: output, shape index: {}]  }
   0x1   :  { %12 = sst [smem:[#allocation2]] %s6287_s6 }
   0x2   :  { %13 = vsyncpa [#allocation5], 0 }
   0x3   :  { %15 = vsyncpa [#allocation5 + $0x1], 0  ;;  %s4259_s26 = smov 0   ;;  %s4261_s27 = smov 0  }
   0x4   :  { %s4263_s28 = smov 0   ;;  %s4265_s29 = smov 0  }
   0x5 LB: > { %s3378_s6 = sadd.s32 4294967295, %s4213_s29   ;;  %s3379_s30 = sadd.s32 4294967294, %s4213_s29   ;;  %s4213_s29 = sphi %s4265_s29, %s6490_s29   ;;  %s4209_s28 = sphi %s4263_s28, %s6489_s28   ;;  %s4205_s27 = sphi %s4261_s27, %s6488_s27   ;;  %s4201_s26 = sphi %s4259_s26, %s6487_s26  }
   0x6   : > { %s4282_s8 = sadd.s32 1, %s4213_s29   ;;  %s28_s9 = sadd.s32 1, %s4209_s28 }
   0x7   : > { %s25_s10 = ssub.s32 %s4213_s29, %s4282_s8  ;;  %p35_p0 = scmp.ne.s32.totalorder %s4209_s28, %s4205_s27 }
   0x8   : > { %p26_p1 = scmp.eq.s32.totalorder %s25_s10, 0  ;;  %p36_p2 = scmp.eq.s32.totalorder %s4213_s29, 0 }
   0x9   : > { %p191_p3 = scmp.eq.s32.totalorder %s3378_s6, 1  ;;  %p196_p4 = scmp.ne.s32.totalorder %s4205_s27, %s4201_s26 }
   0xa   : > { %s4295_s11 = scalar_select %p26_p1, %s4209_s28, %s28_s9  }
   0xb   : > { %p37_p5 = por %p36_p2, %p35_p0  ;;  %p4297_p6 = por %p191_p3, %p35_p0 }
   0xc   : > { %p197_p7 = scmp.eq.s32.totalorder %s3379_s30, 1  ;;  %p3381_p9 = scmp.ge.s32.totalorder %s4213_s29, 2 }
   0xe   : > { %p4301_p8 = por %p197_p7, %p196_p4  ;;  %231 = sbr.rel (%p3381_p9) target bundleno = 27 (0x1b), region = 40 }
  0x13   : > { %234 = sbr.rel (!%p37_p5) target bundleno = 27 (0x1b), region = 44  ;;  %s236_s14 = sand.u32 (%p37_p5), 1, %s4209_s28  }
  0x14   : > { %s3383_s15 = sshll.u32 (%p37_p5), %s4213_s29, 2  ;;  %s3382_s16 = sshll.u32 (%p37_p5), %s236_s14, 4 }
  0x15   : > { %s240_s19 = scalar_lea.vmem (%p37_p5), %s6281_s0, %s3383_s15  ;;  %s238_s20 = scalar_lea.vmem (%p37_p5), [#allocation3], %s3382_s16 }
  0x16   : > { %v257_v0 = vld [vmem:[%s240_s19] sm:$0xf] (%p37_p5)  ;;  %v259_v1 = vld [vmem:[%s240_s19 + $0x8] sm:$0xf] (%p37_p5)  ;;  %v261_v2 = vld [vmem:[%s240_s19 + $0x10] sm:$0xf] (%p37_p5) }
  0x17   : > { %258 = vst [vmem:[%s238_s20] sm:$0xf] (%p37_p5), %v257_v0  ;;  %v263_v3 = vld [vmem:[%s240_s19 + $0x18] sm:$0xf] (%p37_p5) }
  0x18   : > { %260 = vst [vmem:[%s238_s20 + $0x4] sm:$0xf] %v259_v1 }
  0x19   : > { %262 = vst [vmem:[%s238_s20 + $0x8] sm:$0xf] %v261_v2 }
  0x1a   : > { %264 = vst [vmem:[%s238_s20 + $0xc] sm:$0xf] %v263_v3 }
  0x1b PF: > { %p3384_p10 = scmp.ge.s32.totalorder %s4213_s29, 1  ;;  %p295_p11 = scmp.lt.s32.totalorder %s4213_s29, 3 }
  0x1d   : > { %p296_p12 = pnand %p3384_p10, %p295_p11 }
  0x1f   : > { %299 = sbr.rel (%p296_p12) target bundleno = 1118 (0x45e), region = 85 }
  0x24   : > { %v469_v4 = vld [vmem:[%s6283_s2 + $0x20] sm:$0xff]  ;;  %v467_v5 = vld [vmem:[%s6283_s2 + $0x10] sm:$0xff]  ;;  %s4325_s9 = sand.u32 1, %s4205_s27   ;;  %v4215_v7 = vmov 0   ;;  %v470_v10 = vld [vmem:[%s6283_s2 + $0x28] sm:$0xff]  ;;  %vm1565_vm0 = vcmask 261120   ;;  %s3314_s16 = scalar_lea.hbm %s6288_s7, %s3378_s6 }
  0x25   : > { %v465_v6 = vld [vmem:[%s6283_s2] sm:$0xff]  ;;  %4150 = vset.pattern.permute.xlu2 %v4215_v7  ;;  %4149 = vset.pattern.permute.xlu1 %v4215_v7  ;;  %s3385_s10 = sshll.u32 %s4325_s9, 4  ;;  %v468_v11 = vld [vmem:[%s6283_s2 + $0x18] sm:$0xff]  ;;  %v466_v12 = vld [vmem:[%s6283_s2 + $0x8] sm:$0xff]  ;;  %s331_s17 = scalar_lea.vmem [#allocation4], %s4325_s9 }
  0x26   : > { %4148 = vset.pattern.permute.xlu0 %v4215_v7  ;;  %615 = vperm.xlu2 %4150, %v469_v4   ;;  %s304_s14 = scalar_lea.vmem [#allocation3], %s3385_s10  ;;  %v3972_v13 = vld [vmem:[%s6282_s1] sm:$0xff]  ;;  %v4019_v14 = vld [vmem:[%s6282_s1 + $0x178] sm:$0xff]  ;;  %v471_v17 = vld [vmem:[%s6283_s2 + $0x30] sm:$0xff]  ;;  %s3300_s10 = sld [smem:[#allocation2]] }
  0x27   : > { %605 = vperm.xlu1 %4149, %v467_v5   ;;  %595 = vperm.xlu0 %4148, %v465_v6   ;;  %v4037_v8 = vld [vmem:[%s304_s14 + $0x8] sm:$0xff]  ;;  %v4036_v9 = vld [vmem:[%s304_s14] sm:$0xff]  ;;  %s3316_s18 = sshll.u32 %s331_s17, 4  ;;  %s3318_s19 = sshll.u32 %s3314_s16, 4  ;;  %s3317_s18 = int_to_ptr.vmem [resolvable:$true] %s3316_s18  ;;  %s3319_s19 = int_to_ptr.hbm [resolvable:$true] %s3318_s19 }
  0x28   : > { %1764 = vmatpush.bf16.msra.mxu0 %v4037_v8  ;;  %4104 = vmatpush.bf16.msra.mxu3 %v4037_v8  ;;  %v473_v15 = vld [vmem:[%s6283_s2 + $0x40] sm:$0xff]  ;;  %v472_v16 = vld [vmem:[%s6283_s2 + $0x38] sm:$0xff]  ;;  %v475_v19 = vld [vmem:[%s6283_s2 + $0x50] sm:$0xff]  ;;  %s3306_s20 = scalar_lea.sflag [#allocation5], %s4325_s9  ;;  %s4165_s21 = sshra.s32 %s3319_s19, 4  ;;  %s4166_s21 = int_to_ptr.hbm [resolvable:$true] %s4165_s21 }
  0x29   : > { %4102 = vmatpush.bf16.msra.mxu1 %v4037_v8  ;;  %4103 = vmatpush.bf16.msra.mxu2 %v4037_v8  ;;  %v476_v18 = vld [vmem:[%s6283_s2 + $0x58] sm:$0xff]  ;;  %v474_v20 = vld [vmem:[%s6283_s2 + $0x48] sm:$0xff]  ;;  %v4020_v22 = vld [vmem:[%s6282_s1 + $0x180] sm:$0xff]  ;;  %s4167_s22 = scalar_lea.hbm %s4166_s21, 1  ;;  %s4171_s24 = scalar_lea.hbm %s6288_s7, 2 }
  0x2a   : > { %v3973_v21 = vld [vmem:[%s6282_s1 + $0x8] sm:$0xff]  ;;  %v479_v23 = vld [vmem:[%s6283_s2 + $0x70] sm:$0xff]  ;;  %v477_v25 = vld [vmem:[%s6283_s2 + $0x60] sm:$0xff]  ;;  %p4168_p13 = scmp.ne.s32.totalorder %s4166_s21, %s4167_s22  ;;  %p4172_p2 = scmp.lt.s32.totalorder %s4166_s21, %s6288_s7 }
  0x2b   : > { %v478_v24 = vld [vmem:[%s6283_s2 + $0x68] sm:$0xff]  ;;  %v481_v27 = vld [vmem:[%s6283_s2 + $0x80] sm:$0xff]  ;;  %v480_v28 = vld [vmem:[%s6283_s2 + $0x78] sm:$0xff]  ;;  %p4173_p3 = scmp.lt.s32.totalorder %s4171_s24, %s4167_s22 }
  0x2c   : > { %1765 = vmatpush.bf16.msra.mxu0 %v4036_v9  ;;  %4107 = vmatpush.bf16.msra.mxu3 %v4036_v9  ;;  %v482_v26 = vld [vmem:[%s6283_s2 + $0x88] sm:$0xff]  ;;  %v3974_v29 = vld [vmem:[%s6282_s1 + $0x10] sm:$0xff]  ;;  %v485_v31 = vld [vmem:[%s6283_s2 + $0xa0] sm:$0xff]  ;;  %p4169_p0 = pnand %p4168_p13, %p4297_p6 }
  0x2d   : > { %4105 = vmatpush.bf16.msra.mxu1 %v4036_v9  ;;  %4106 = vmatpush.bf16.msra.mxu2 %v4036_v9  ;;  %v4021_v30 = vld [vmem:[%s6282_s1 + $0x188] sm:$0xff]  ;;  %v484_v32 = vld [vmem:[%s6283_s2 + $0x98] sm:$0xff]  ;;  %v483_v33 = vld [vmem:[%s6283_s2 + $0x90] sm:$0xff]  ;;  %p4174_p4 = por %p4173_p3, %p4172_p2 }
  0x2e   : > { %620 = vperm.xlu2 %4150, %v470_v10   ;;  %v488_v34 = vld [vmem:[%s6283_s2 + $0xb8] sm:$0xff]  ;;  %v487_v35 = vld [vmem:[%s6283_s2 + $0xb0] sm:$0xff]  ;;  %v486_v36 = vld [vmem:[%s6283_s2 + $0xa8] sm:$0xff]  ;;  %p4170_p1 = pneg %p4169_p0 }
  0x2f   : > { %610 = vperm.xlu1 %4149, %v468_v11   ;;  %600 = vperm.xlu0 %4148, %v466_v12   ;;  %v3975_v37 = vld [vmem:[%s6282_s1 + $0x18] sm:$0xff]  ;;  %v4022_v38 = vld [vmem:[%s6282_s1 + $0x190] sm:$0xff]  ;;  %v490_v40 = vld [vmem:[%s6283_s2 + $0xc8] sm:$0xff] }
  0x30   : > { %3650 = vmatmul.msk.bf16.vlgmr.msra.gmra.mxu0 %vm1565_vm0, %v3972_v13  ;;  %3697 = vmatmul.msk.bf16.vlgmr.msra.gmra.mxu3 %vm1565_vm0, %v4019_v14  ;;  %v491_v39 = vld [vmem:[%s6283_s2 + $0xd0] sm:$0xff]  ;;  %v489_v41 = vld [vmem:[%s6283_s2 + $0xc0] sm:$0xff]  ;;  %v494_v42 = vld [vmem:[%s6283_s2 + $0xe8] sm:$0xff]  ;;  %p4175_p5 = pnand %p4174_p4, %p4170_p1 }
  0x31   : > { %v493_v43 = vld [vmem:[%s6283_s2 + $0xe0] sm:$0xff]  ;;  %v492_v44 = vld [vmem:[%s6283_s2 + $0xd8] sm:$0xff]  ;;  %v495_v49 = vld [vmem:[%s6283_s2 + $0xf0] sm:$0xff] }
  0x32   : > { %v3976_v45 = vld [vmem:[%s6282_s1 + $0x20] sm:$0xff]  ;;  %v4023_v46 = vld [vmem:[%s6282_s1 + $0x198] sm:$0xff]  ;;  %v499_v51 = vld [vmem:[%s6283_s2 + $0x110] sm:$0xff] }
  0x33   : > { %v497_v47 = vld [vmem:[%s6283_s2 + $0x100] sm:$0xff]  ;;  %v496_v48 = vld [vmem:[%s6283_s2 + $0xf8] sm:$0xff]  ;;  %v498_v52 = vld [vmem:[%s6283_s2 + $0x108] sm:$0xff] }
  0x34   : > { %v500_v50 = vld [vmem:[%s6283_s2 + $0x118] sm:$0xff]  ;;  %v3977_v53 = vld [vmem:[%s6282_s1 + $0x28] sm:$0xff]  ;;  %v4024_v54 = vld [vmem:[%s6282_s1 + $0x1a0] sm:$0xff] }
  0x35   : > { %v503_v56 = vld [vmem:[%s6283_s2 + $0x130] sm:$0xff]  ;;  %v502_v57 = vld [vmem:[%s6283_s2 + $0x128] sm:$0xff]  ;;  %v501_v58 = vld [vmem:[%s6283_s2 + $0x120] sm:$0xff] }
  0x36   : > { %635 = vperm.xlu2 %4150, %v473_v15   ;;  %v506_v60 = vld [vmem:[%s6283_s2 + $0x148] sm:$0xff]  ;;  %v505_v61 = vld [vmem:[%s6283_s2 + $0x140] sm:$0xff]  ;;  %v504_v62 = vld [vmem:[%s6283_s2 + $0x138] sm:$0xff] }
  0x37   : > { %630 = vperm.xlu1 %4149, %v472_v16   ;;  %625 = vperm.xlu0 %4148, %v471_v17   ;;  %v3978_v63 = vld [vmem:[%s6282_s1 + $0x30] sm:$0xff]  ;;  %v4025_v0 = vld [vmem:[%s6282_s1 + $0x1a8] sm:$0xff]  ;;  %v509_v2 = vld [vmem:[%s6283_s2 + $0x160] sm:$0xff] }
  0x38   : > { %v508_v3 = vld [vmem:[%s6283_s2 + $0x158] sm:$0xff]  ;;  %v507_v4 = vld [vmem:[%s6283_s2 + $0x150] sm:$0xff]  ;;  %v4005_v8 = vld [vmem:[%s6282_s1 + $0x108] sm:$0xff] }
  0x39   : > { %v512_v9 = vld [vmem:[%s6283_s2 + $0x178] sm:$0xff]  ;;  %v511_v10 = vld [vmem:[%s6283_s2 + $0x170] sm:$0xff]  ;;  %3683 = vmatmul.msk.bf16.vlgmr.msra.gmra.mxu1 %vm1565_vm0, %v4005_v8  ;;  %v510_v11 = vld [vmem:[%s6283_s2 + $0x168] sm:$0xff] }
  0x3a   : > { %v3979_v12 = vld [vmem:[%s6282_s1 + $0x38] sm:$0xff]  ;;  %v4026_v13 = vld [vmem:[%s6282_s1 + $0x1b0] sm:$0xff]  ;;  %v4008_v8 = vld [vmem:[%s6282_s1 + $0x120] sm:$0xff] }
  0x3b   : > { %v515_v17 = vld [vmem:[%s6283_s2 + $0x190] sm:$0xff] }
  0x3e   : > { %650 = vperm.xlu2 %4150, %v476_v18   ;;  %v514_v18 = vld [vmem:[%s6283_s2 + $0x188] sm:$0xff] }
  0x3f   : > { %645 = vperm.xlu1 %4149, %v475_v19   ;;  %640 = vperm.xlu0 %4148, %v474_v20   ;;  %v513_v19 = vld [vmem:[%s6283_s2 + $0x180] sm:$0xff] }
  0x40   : > { %3651 = vmatmul.msk.bf16.gmra.mxu0 %vm1565_vm0, %v3973_v21  ;;  %3698 = vmatmul.msk.bf16.gmra.mxu3 %vm1565_vm0, %v4020_v22 }
  0x46   : > { %665 = vperm.xlu2 %4150, %v479_v23   ;;  %v4006_v23 = vld [vmem:[%s6282_s1 + $0x110] sm:$0xff] }
  0x47   : > { %660 = vperm.xlu1 %4149, %v478_v24   ;;  %655 = vperm.xlu0 %4148, %v477_v25   ;;  %v518_v24 = vld [vmem:[%s6283_s2 + $0x1a8] sm:$0xff]  ;;  %v517_v25 = vld [vmem:[%s6283_s2 + $0x1a0] sm:$0xff] }
  0x49   : > { %3684 = vmatmul.msk.bf16.gmra.mxu1 %vm1565_vm0, %v4006_v23  ;;  %v4015_v23 = vld [vmem:[%s6282_s1 + $0x158] sm:$0xff] }
  0x4e   : > { %680 = vperm.xlu2 %4150, %v482_v26   ;;  %v516_v26 = vld [vmem:[%s6283_s2 + $0x198] sm:$0xff] }
  0x4f   : > { %675 = vperm.xlu1 %4149, %v481_v27   ;;  %670 = vperm.xlu0 %4148, %v480_v28   ;;  %v3980_v27 = vld [vmem:[%s6282_s1 + $0x40] sm:$0xff]  ;;  %v4027_v28 = vld [vmem:[%s6282_s1 + $0x1b8] sm:$0xff] }
  0x50   : > { %3652 = vmatmul.msk.bf16.gmra.mxu0 %vm1565_vm0, %v3974_v29  ;;  %3699 = vmatmul.msk.bf16.gmra.mxu3 %vm1565_vm0, %v4021_v30 }
  0x56   : > { %695 = vperm.xlu2 %4150, %v485_v31  }
  0x57   : > { %690 = vperm.xlu1 %4149, %v484_v32   ;;  %685 = vperm.xlu0 %4148, %v483_v33   ;;  %v4013_v33 = vld [vmem:[%s6282_s1 + $0x148] sm:$0xff] }
  0x58   : > { %3691 = vmatmul.msk.bf16.vlgmr.msra.gmra.mxu2 %vm1565_vm0, %v4013_v33 }
  0x5e   : > { %710 = vperm.xlu2 %4150, %v488_v34   ;;  %v521_v34 = vld [vmem:[%s6283_s2 + $0x1c0] sm:$0xff] }
  0x5f   : > { %705 = vperm.xlu1 %4149, %v487_v35   ;;  %700 = vperm.xlu0 %4148, %v486_v36   ;;  %v520_v36 = vld [vmem:[%s6283_s2 + $0x1b8] sm:$0xff] }
  0x60   : > { %3653 = vmatmul.msk.bf16.gmra.mxu0 %vm1565_vm0, %v3975_v37  ;;  %3700 = vmatmul.msk.bf16.gmra.mxu3 %vm1565_vm0, %v4022_v38  ;;  %v519_v37 = vld [vmem:[%s6283_s2 + $0x1b0] sm:$0xff] }
  0x66   : > { %725 = vperm.xlu2 %4150, %v491_v39  }
  0x67   : > { %720 = vperm.xlu1 %4149, %v490_v40   ;;  %715 = vperm.xlu0 %4148, %v489_v41  }
  0x6e   : > { %740 = vperm.xlu2 %4150, %v494_v42  }
  0x6f   : > { %735 = vperm.xlu1 %4149, %v493_v43   ;;  %730 = vperm.xlu0 %4148, %v492_v44  }
  0x70   : > { %3654 = vmatmul.msk.bf16.gmra.mxu0 %vm1565_vm0, %v3976_v45  ;;  %3701 = vmatmul.msk.bf16.gmra.mxu3 %vm1565_vm0, %v4023_v46  ;;  %v4007_v45 = vld [vmem:[%s6282_s1 + $0x118] sm:$0xff] }
  0x71   : > { %3685 = vmatmul.msk.bf16.gmra.mxu1 %vm1565_vm0, %v4007_v45  ;;  %v3983_v45 = vld [vmem:[%s6282_s1 + $0x58] sm:$0xff] }
  0x76   : > { %755 = vperm.xlu2 %4150, %v497_v47   ;;  %v524_v47 = vld [vmem:[%s6283_s2 + $0x1d8] sm:$0xff] }
  0x77   : > { %750 = vperm.xlu1 %4149, %v496_v48   ;;  %745 = vperm.xlu0 %4148, %v495_v49   ;;  %v523_v48 = vld [vmem:[%s6283_s2 + $0x1d0] sm:$0xff]  ;;  %v522_v49 = vld [vmem:[%s6283_s2 + $0x1c8] sm:$0xff] }
  0x7e   : > { %770 = vperm.xlu2 %4150, %v500_v50   ;;  %v3981_v50 = vld [vmem:[%s6282_s1 + $0x48] sm:$0xff] }
  0x7f   : > { %765 = vperm.xlu1 %4149, %v499_v51   ;;  %760 = vperm.xlu0 %4148, %v498_v52   ;;  %v4028_v51 = vld [vmem:[%s6282_s1 + $0x1c0] sm:$0xff] }
  0x80   : > { %v4473_v55 = vpop.permute.xlu2 %615  ;;  %3655 = vmatmul.msk.bf16.gmra.mxu0 %vm1565_vm0, %v3977_v53  ;;  %3702 = vmatmul.msk.bf16.gmra.mxu3 %vm1565_vm0, %v4024_v54 }
  0x81   : > { %3686 = vmatmul.msk.bf16.gmra.mxu1 %vm1565_vm0, %v4008_v8 }
  0x86   : > { %785 = vperm.xlu2 %4150, %v503_v56  }
  0x87   : > { %780 = vperm.xlu1 %4149, %v502_v57   ;;  %775 = vperm.xlu0 %4148, %v501_v58   ;;  %v4014_v57 = vld [vmem:[%s6282_s1 + $0x150] sm:$0xff] }
  0x88   : > { %v4486_v59 = vpop.permute.xlu2 %620  ;;  %v527_v58 = vld [vmem:[%s6283_s2 + $0x1f0] sm:$0xff]  ;;  %3692 = vmatmul.msk.bf16.gmra.mxu2 %vm1565_vm0, %v4014_v57  ;;  %v4016_v57 = vld [vmem:[%s6282_s1 + $0x160] sm:$0xff] }
  0x8e   : > { %800 = vperm.xlu2 %4150, %v506_v60  }
  0x8f   : > { %795 = vperm.xlu1 %4149, %v505_v61   ;;  %790 = vperm.xlu0 %4148, %v504_v62   ;;  %v526_v61 = vld [vmem:[%s6283_s2 + $0x1e8] sm:$0xff]  ;;  %v525_v62 = vld [vmem:[%s6283_s2 + $0x1e0] sm:$0xff] }
  0x90   : > { %v4503_v1 = vpop.permute.xlu2 %635  ;;  %3656 = vmatmul.msk.bf16.gmra.mxu0 %vm1565_vm0, %v3978_v63  ;;  %3703 = vmatmul.msk.bf16.gmra.mxu3 %vm1565_vm0, %v4025_v0 }
  0x96   : > { %815 = vperm.xlu2 %4150, %v509_v2  }
  0x97   : > { %810 = vperm.xlu1 %4149, %v508_v3   ;;  %805 = vperm.xlu0 %4148, %v507_v4  }
  0x98   : > { %v4516_v5 = vpop.permute.xlu2 %650  ;;  %3693 = vmatmul.msk.bf16.gmra.mxu2 %vm1565_vm0, %v4015_v23  ;;  %v3984_v23 = vld [vmem:[%s6282_s1 + $0x60] sm:$0xff] }
  0x99   : > { %v4518_v6 = vpop.permute.xlu1 %605  ;;  %v596_v7 = vpop.permute.xlu0 %595 }
  0x9e   : > { %830 = vperm.xlu2 %4150, %v512_v9  }
  0x9f   : > { %825 = vperm.xlu1 %4149, %v511_v10   ;;  %820 = vperm.xlu0 %4148, %v510_v11   ;;  %v530_v10 = vld [vmem:[%s6283_s2 + $0x208] sm:$0xff]  ;;  %v529_v11 = vld [vmem:[%s6283_s2 + $0x200] sm:$0xff] }
  0xa0   : > { %v4539_v14 = vpop.permute.xlu2 %665  ;;  %3657 = vmatmul.msk.bf16.gmra.mxu0 %vm1565_vm0, %v3979_v12  ;;  %3704 = vmatmul.msk.bf16.gmra.mxu3 %vm1565_vm0, %v4026_v13  ;;  %v528_v12 = vld [vmem:[%s6283_s2 + $0x1f8] sm:$0xff]  ;;  %v3982_v13 = vld [vmem:[%s6282_s1 + $0x50] sm:$0xff] }
  0xa1   : > { %v4543_v15 = vpop.permute.xlu1 %610  ;;  %v601_v16 = vpop.permute.xlu0 %600 }
  0xa6   : > { %845 = vperm.xlu2 %4150, %v515_v17  }
  0xa7   : > { %840 = vperm.xlu1 %4149, %v514_v18   ;;  %835 = vperm.xlu0 %4148, %v513_v19  }
  0xa8   : > { %v4554_v20 = vpop.permute.xlu2 %680  ;;  %3694 = vmatmul.msk.bf16.gmra.mxu2 %vm1565_vm0, %v4016_v57  ;;  %v548_v57 = vld [vmem:[%s6283_s2 + $0x298] sm:$0xff] }
  0xa9   : > { %v4556_v21 = vpop.permute.xlu1 %630  ;;  %v4558_v22 = vpop.permute.xlu0 %625 }
  0xad   : > { %v1767_v29 = vpop.f32.mrf.mxu0 }
  0xae   : > { %860 = vperm.xlu2 %4150, %v518_v24   ;;  %v1768_v35 = vadd.f32 %v1767_v29, %v596_v7  ;;  %v533_v24 = vld [vmem:[%s6283_s2 + $0x220] sm:$0xff] }
  0xaf   : > { %855 = vperm.xlu1 %4149, %v517_v25   ;;  %850 = vperm.xlu0 %4148, %v516_v26   ;;  %v532_v26 = vld [vmem:[%s6283_s2 + $0x218] sm:$0xff] }
  0xb0   : > { %v4579_v30 = vpop.permute.xlu2 %695  ;;  %3658 = vmatmul.msk.bf16.gmra.mxu0 %vm1565_vm0, %v3980_v27  ;;  %3705 = vmatmul.msk.bf16.gmra.mxu3 %vm1565_vm0, %v4027_v28  ;;  %v2087_v40 = vmax.f32 %v1768_v35, 0.0  ;;  %v531_v27 = vld [vmem:[%s6283_s2 + $0x210] sm:$0xff] }
  0xb1   : > { %v4583_v31 = vpop.permute.xlu1 %645  ;;  %v4585_v32 = vpop.permute.xlu0 %640 }
  0xb3   : > { %v4699_v29 = vpop.f32.mrf.mxu3 }
  0xb4   : > { %6291 = vst [vmem:[#allocation7_spill] sm:$0xff] %v4699_v29  ;;  %v559_v29 = vld [vmem:[%s6283_s2 + $0x2f0] sm:$0xff] }
  0xb5   : > { %v1769_v38 = vpop.f32.mrf.mxu0 }
  0xb6   : > { %875 = vperm.xlu2 %4150, %v521_v34   ;;  %v1770_v39 = vadd.f32 %v1769_v38, %v601_v16  ;;  %v4009_v38 = vld [vmem:[%s6282_s1 + $0x128] sm:$0xff] }
  0xb7   : > { %870 = vperm.xlu1 %4149, %v520_v36   ;;  %865 = vperm.xlu0 %4148, %v519_v37  }
  0xb8   : > { %v2088_v41 = vmax.f32 %v1770_v39, 0.0  ;;  %v4600_v42 = vpop.permute.xlu2 %710  ;;  %3687 = vmatmul.msk.bf16.gmra.mxu1 %vm1565_vm0, %v4009_v38  ;;  %v544_v38 = vld [vmem:[%s6283_s2 + $0x278] sm:$0xff] }
  0xb9   : > { %v4602_v43 = vpop.permute.xlu1 %660  ;;  %v4604_v44 = vpop.permute.xlu0 %655 }
  0xba   : > { %v4609_v46 = vpack.c.bf16 %v2088_v41, %v2087_v40  ;;  %v535_v40 = vld [vmem:[%s6283_s2 + $0x230] sm:$0xff]  ;;  %v534_v41 = vld [vmem:[%s6283_s2 + $0x228] sm:$0xff] }
  0xbd   : > { %v1772_v52 = vpop.f32.mrf.mxu0 }
  0xbe   : > { %890 = vperm.xlu2 %4150, %v524_v47   ;;  %v1773_v60 = vadd.f32 %v1772_v52, %v4518_v6  ;;  %v4030_v47 = vld [vmem:[%s6282_s1 + $0x1d0] sm:$0xff] }
  0xbf   : > { %885 = vperm.xlu1 %4149, %v523_v48   ;;  %880 = vperm.xlu0 %4148, %v522_v49   ;;  %v4729_v49 = vpop.f32.mrf.mxu3 }
  0xc0   : > { %v4627_v53 = vpop.permute.xlu2 %725  ;;  %3659 = vmatmul.msk.bf16.gmra.mxu0 %vm1565_vm0, %v3981_v50  ;;  %3706 = vmatmul.msk.bf16.gmra.mxu3 %vm1565_vm0, %v4028_v51  ;;  %v2089_v2 = vmax.f32 %v1773_v60, 0.0  ;;  %6292 = vst [vmem:[#allocation8_spill] sm:$0xff] %v4729_v49 }
  0xc1   : > { %v4631_v54 = vpop.permute.xlu1 %675  ;;  %v4633_v56 = vpop.permute.xlu0 %670 }
  0xc5   : > { %v1774_v63 = vpop.f32.mrf.mxu0 }
  0xc6   : > { %905 = vperm.xlu2 %4150, %v527_v58   ;;  %v1775_v0 = vadd.f32 %v1774_v63, %v4543_v15  ;;  %v4029_v15 = vld [vmem:[%s6282_s1 + $0x1c8] sm:$0xff]  ;;  %v539_v58 = vld [vmem:[%s6283_s2 + $0x250] sm:$0xff] }
  0xc7   : > { %900 = vperm.xlu1 %4149, %v526_v61   ;;  %895 = vperm.xlu0 %4148, %v525_v62   ;;  %v538_v61 = vld [vmem:[%s6283_s2 + $0x248] sm:$0xff]  ;;  %v537_v62 = vld [vmem:[%s6283_s2 + $0x240] sm:$0xff] }
  0xc8   : > { %v2090_v3 = vmax.f32 %v1775_v0, 0.0  ;;  %v4650_v4 = vpop.permute.xlu2 %740 }
  0xc9   : > { %v4652_v7 = vpop.permute.xlu1 %690  ;;  %v4654_v6 = vpop.permute.xlu0 %685 }
  0xca   : > { %v4659_v9 = vpack.c.bf16 %v2090_v3, %v2089_v2 }
  0xcd   : > { %v1777_v16 = vpop.f32.mrf.mxu0 }
  0xce   : > { %920 = vperm.xlu2 %4150, %v530_v10   ;;  %v1778_v25 = vadd.f32 %v1777_v16, %v4473_v55  ;;  %v540_v16 = vld [vmem:[%s6283_s2 + $0x258] sm:$0xff] }
  0xcf   : > { %915 = vperm.xlu1 %4149, %v529_v11   ;;  %910 = vperm.xlu0 %4148, %v528_v12   ;;  %v4010_v11 = vld [vmem:[%s6282_s1 + $0x130] sm:$0xff]  ;;  %v4763_v12 = vpop.f32.mrf.mxu3 }
  0xd0   : > { %v4677_v17 = vpop.permute.xlu2 %755  ;;  %3660 = vmatmul.msk.bf16.gmra.mxu0 %vm1565_vm0, %v3982_v13  ;;  %3707 = vmatmul.msk.bf16.gmra.mxu3 %vm1565_vm0, %v4029_v15  ;;  %v2091_v34 = vmax.f32 %v1778_v25, 0.0  ;;  %v541_v15 = vld [vmem:[%s6283_s2 + $0x260] sm:$0xff] }
  0xd1   : > { %v4681_v18 = vpop.permute.xlu1 %705  ;;  %v4683_v19 = vpop.permute.xlu0 %700  ;;  %3688 = vmatmul.msk.bf16.gmra.mxu1 %vm1565_vm0, %v4010_v11 }
  0xd5   : > { %v1779_v28 = vpop.f32.mrf.mxu0 }
  0xd6   : > { %935 = vperm.xlu2 %4150, %v533_v24   ;;  %v1780_v33 = vadd.f32 %v1779_v28, %v4486_v59  ;;  %v536_v59 = vld [vmem:[%s6283_s2 + $0x238] sm:$0xff] }
  0xd7   : > { %930 = vperm.xlu1 %4149, %v532_v26   ;;  %925 = vperm.xlu0 %4148, %v531_v27   ;;  %v4031_v24 = vld [vmem:[%s6282_s1 + $0x1d8] sm:$0xff] }
  0xd8   : > { %v2092_v35 = vmax.f32 %v1780_v33, 0.0  ;;  %v4702_v36 = vpop.permute.xlu2 %770  ;;  %v4017_v33 = vld [vmem:[%s6282_s1 + $0x168] sm:$0xff] }
  0xd9   : > { %v4704_v55 = vpop.permute.xlu1 %720  ;;  %v4706_v37 = vpop.permute.xlu0 %715  ;;  %3695 = vmatmul.msk.bf16.gmra.mxu2 %vm1565_vm0, %v4017_v33 }
  0xda   : > { %v4711_v39 = vpack.c.bf16 %v2092_v35, %v2091_v34  ;;  %v545_v34 = vld [vmem:[%s6283_s2 + $0x280] sm:$0xff]  ;;  %v4800_v35 = vpop.f32.mrf.mxu3 }
  0xdd   : > { %v1782_v48 = vpop.f32.mrf.mxu0 }
  0xde   : > { %950 = vperm.xlu2 %4150, %v536_v59   ;;  %v1783_v60 = vadd.f32 %v1782_v48, %v4558_v22  ;;  %v543_v59 = vld [vmem:[%s6283_s2 + $0x270] sm:$0xff]  ;;  %v4011_v48 = vld [vmem:[%s6282_s1 + $0x138] sm:$0xff] }
  0xdf   : > { %945 = vperm.xlu1 %4149, %v535_v40   ;;  %940 = vperm.xlu0 %4148, %v534_v41  }
  0xe0   : > { %v4731_v50 = vpop.permute.xlu2 %785  ;;  %3661 = vmatmul.msk.bf16.gmra.mxu0 %vm1565_vm0, %v3983_v45  ;;  %3708 = vmatmul.msk.bf16.gmra.mxu3 %vm1565_vm0, %v4030_v47  ;;  %v2093_v2 = vmax.f32 %v1783_v60, 0.0  ;;  %v546_v60 = vld [vmem:[%s6283_s2 + $0x288] sm:$0xff] }
  0xe1   : > { %6293 = vst [vmem:[#allocation9_spill] sm:$0xff] %v4731_v50  ;;  %v4735_v51 = vpop.permute.xlu1 %735  ;;  %v4737_v52 = vpop.permute.xlu0 %730  ;;  %3689 = vmatmul.msk.bf16.gmra.mxu1 %vm1565_vm0, %v4011_v48  ;;  %v4012_v48 = vld [vmem:[%s6282_s1 + $0x140] sm:$0xff] }
  0xe5   : > { %v1784_v63 = vpop.f32.mrf.mxu0 }
  0xe6   : > { %965 = vperm.xlu2 %4150, %v539_v58   ;;  %v1785_v0 = vadd.f32 %v1784_v63, %v4556_v21  ;;  %v542_v21 = vld [vmem:[%s6283_s2 + $0x268] sm:$0xff]  ;;  %v547_v58 = vld [vmem:[%s6283_s2 + $0x290] sm:$0xff] }
  0xe7   : > { %960 = vperm.xlu1 %4149, %v538_v61   ;;  %955 = vperm.xlu0 %4148, %v537_v62   ;;  %v3985_v61 = vld [vmem:[%s6282_s1 + $0x68] sm:$0xff]  ;;  %v4032_v62 = vld [vmem:[%s6282_s1 + $0x1e0] sm:$0xff] }
  0xe8   : > { %v2094_v3 = vmax.f32 %v1785_v0, 0.0  ;;  %v4754_v8 = vpop.permute.xlu2 %800  ;;  %v4837_v0 = vpop.f32.mrf.mxu3 }
  0xe9   : > { %6294 = vst [vmem:[#allocation10_spill] sm:$0xff] %v4754_v8  ;;  %v4756_v10 = vpop.permute.xlu1 %750  ;;  %v4758_v22 = vpop.permute.xlu0 %745  ;;  %v563_v8 = vld [vmem:[%s6283_s2 + $0x310] sm:$0xff] }
  0xea   : > { %v4765_v13 = vpack.c.bf16 %v2094_v3, %v2093_v2 }
  0xed   : > { %v4783_v25 = vpop.f32.mrf.mxu0 }
  0xee   : > { %980 = vperm.xlu2 %4150, %v542_v21   ;;  %v4018_v21 = vld [vmem:[%s6282_s1 + $0x170] sm:$0xff] }
  0xef   : > { %975 = vperm.xlu1 %4149, %v541_v15   ;;  %970 = vperm.xlu0 %4148, %v540_v16   ;;  %v551_v15 = vld [vmem:[%s6283_s2 + $0x2b0] sm:$0xff]  ;;  %v550_v16 = vld [vmem:[%s6283_s2 + $0x2a8] sm:$0xff] }
  0xf0   : > { %v4785_v26 = vpop.permute.xlu2 %815  ;;  %3662 = vmatmul.msk.bf16.gmra.mxu0 %vm1565_vm0, %v3984_v23  ;;  %3709 = vmatmul.msk.bf16.gmra.mxu3 %vm1565_vm0, %v4031_v24  ;;  %v549_v23 = vld [vmem:[%s6283_s2 + $0x2a0] sm:$0xff]  ;;  %v4862_v33 = vpop.f32.mrf.mxu3 }
  0xf1   : > { %6295 = vst [vmem:[#allocation11_spill] sm:$0xff] %v4785_v26  ;;  %v4789_v27 = vpop.permute.xlu1 %765  ;;  %v4791_v28 = vpop.permute.xlu0 %760  ;;  %3696 = vmatmul.msk.bf16.gmra.mxu2 %vm1565_vm0, %v4018_v21  ;;  %3690 = vmatmul.msk.bf16.gmra.mxu1 %vm1565_vm0, %v4012_v48 }
  0xf5   : > { %v4808_v40 = vpop.f32.mrf.mxu0 }
  0xf6   : > { %995 = vperm.xlu2 %4150, %v545_v34  }
  0xf7   : > { %990 = vperm.xlu1 %4149, %v544_v38   ;;  %985 = vperm.xlu0 %4148, %v543_v59  }
  0xf8   : > { %v4810_v41 = vpop.permute.xlu2 %830  ;;  %v4897_v48 = vpop.f32.mrf.mxu3 }
  0xf9   : > { %6296 = vst [vmem:[#allocation12_spill] sm:$0xff] %v4810_v41  ;;  %v4812_v45 = vpop.permute.xlu1 %780  ;;  %v4814_v47 = vpop.permute.xlu0 %775 }
  0xfa   : > { %6297 = vst [vmem:[#allocation13_spill] sm:$0xff] %v4812_v45 }
  0xfb   : > { %6298 = vst [vmem:[#allocation14_spill] sm:$0xff] %v4814_v47 }
  0xfd   : > { %v4835_v63 = vpop.f32.mrf.mxu0 }
  0xfe   : > { %1010 = vperm.xlu2 %4150, %v548_v57   ;;  %v554_v57 = vld [vmem:[%s6283_s2 + $0x2c8] sm:$0xff] }
  0xff   : > { %1005 = vperm.xlu1 %4149, %v547_v58   ;;  %1000 = vperm.xlu0 %4148, %v546_v60   ;;  %v553_v58 = vld [vmem:[%s6283_s2 + $0x2c0] sm:$0xff]  ;;  %v552_v60 = vld [vmem:[%s6283_s2 + $0x2b8] sm:$0xff] }
 0x100   : > { %v4839_v2 = vpop.permute.xlu2 %845  ;;  %3663 = vmatmul.msk.bf16.gmra.mxu0 %vm1565_vm0, %v3985_v61  ;;  %3710 = vmatmul.msk.bf16.gmra.mxu3 %vm1565_vm0, %v4032_v62  ;;  %v3986_v61 = vld [vmem:[%s6282_s1 + $0x70] sm:$0xff]  ;;  %v4033_v62 = vld [vmem:[%s6282_s1 + $0x1e8] sm:$0xff]  ;;  %v4920_v49 = vpop.f32.mrf.mxu3 }
 0x101   : > { %6299 = vst [vmem:[#allocation15_spill] sm:$0xff] %v4839_v2  ;;  %v4843_v3 = vpop.permute.xlu1 %795  ;;  %v4845_v11 = vpop.permute.xlu0 %790  ;;  %v560_v2 = vld [vmem:[%s6283_s2 + $0x2f8] sm:$0xff] }
 0x102   : > { %6300 = vst [vmem:[#allocation16_spill] sm:$0xff] %v4843_v3 }
 0x103   : > { %6301 = vst [vmem:[#allocation17_spill] sm:$0xff] %v4845_v11 }
 0x105   : > { %v4860_v24 = vpop.f32.mrf.mxu0 }
 0x106   : > { %1025 = vperm.xlu2 %4150, %v551_v15  }
 0x107   : > { %1020 = vperm.xlu1 %4149, %v550_v16   ;;  %1015 = vperm.xlu0 %4148, %v549_v23  }
 0x108   : > { %v4864_v34 = vpop.permute.xlu2 %860 }
 0x109   : > { %6302 = vst [vmem:[#allocation18_spill] sm:$0xff] %v4864_v34  ;;  %v4866_v38 = vpop.permute.xlu1 %810  ;;  %v4868_v59 = vpop.permute.xlu0 %805  ;;  %v557_v34 = vld [vmem:[%s6283_s2 + $0x2e0] sm:$0xff] }
 0x10a   : > { %6303 = vst [vmem:[#allocation19_spill] sm:$0xff] %v4866_v38 }
 0x10b   : > { %6304 = vst [vmem:[#allocation20_spill] sm:$0xff] %v4868_v59 }
 0x10d   : > { %v1797_v21 = vpop.f32.mrf.mxu0 }
 0x10e   : > { %1040 = vperm.xlu2 %4150, %v554_v57   ;;  %v556_v57 = vld [vmem:[%s6283_s2 + $0x2d8] sm:$0xff] }
 0x10f   : > { %1035 = vperm.xlu1 %4149, %v553_v58   ;;  %1030 = vperm.xlu0 %4148, %v552_v60   ;;  %v555_v58 = vld [vmem:[%s6283_s2 + $0x2d0] sm:$0xff] }
 0x110   : > { %v4889_v15 = vpop.permute.xlu2 %875  ;;  %3664 = vmatmul.msk.bf16.gmra.mxu0 %vm1565_vm0, %v3986_v61  ;;  %3711 = vmatmul.msk.bf16.gmra.mxu3 %vm1565_vm0, %v4033_v62 }
 0x111   : > { %6305 = vst [vmem:[#allocation21_spill] sm:$0xff] %v4889_v15  ;;  %v4893_v16 = vpop.permute.xlu1 %825  ;;  %v4895_v23 = vpop.permute.xlu0 %820 }
 0x112   : > { %6306 = vst [vmem:[#allocation22_spill] sm:$0xff] %v4893_v16  ;;  %v2354_v16 = vld [vmem:[%s6285_s4 + $0x58] sm:$0xff] }
 0x113   : > { %6307 = vst [vmem:[#allocation23_spill] sm:$0xff] %v4895_v23  ;;  %v2352_v23 = vld [vmem:[%s6285_s4 + $0x48] sm:$0xff] }
 0x115   : > { %v1799_v60 = vpop.f32.mrf.mxu0 }
 0x116   : > { %1055 = vperm.xlu2 %4150, %v557_v34   ;;  %v558_v34 = vld [vmem:[%s6283_s2 + $0x2e8] sm:$0xff] }
 0x117   : > { %1050 = vperm.xlu1 %4149, %v556_v57   ;;  %1045 = vperm.xlu0 %4148, %v555_v58   ;;  %v3987_v57 = vld [vmem:[%s6282_s1 + $0x78] sm:$0xff]  ;;  %v4034_v58 = vld [vmem:[%s6282_s1 + $0x1f0] sm:$0xff] }
 0x118   : > { %v4908_v61 = vpop.permute.xlu2 %890 }
 0x119   : > { %6308 = vst [vmem:[#allocation24_spill] sm:$0xff] %v4908_v61  ;;  %v4910_v62 = vpop.permute.xlu1 %840  ;;  %v4912_v15 = vpop.permute.xlu0 %835 }
 0x11a   : > { %6309 = vst [vmem:[#allocation25_spill] sm:$0xff] %v4910_v62 }
 0x11b   : > { %6310 = vst [vmem:[#allocation26_spill] sm:$0xff] %v4912_v15 }
 0x11d   : > { %v1802_v61 = vpop.f32.mrf.mxu0 }
 0x11e   : > { %1070 = vperm.xlu2 %4150, %v560_v2   ;;  %v1803_v59 = vadd.f32 %v1802_v61, %v4539_v14  ;;  %v561_v2 = vld [vmem:[%s6283_s2 + $0x300] sm:$0xff] }
 0x11f   : > { %1065 = vperm.xlu1 %4149, %v559_v29   ;;  %1060 = vperm.xlu0 %4148, %v558_v34   ;;  %v562_v29 = vld [vmem:[%s6283_s2 + $0x308] sm:$0xff] }
 0x120   : > { %v4931_v62 = vpop.permute.xlu2 %905  ;;  %3665 = vmatmul.msk.bf16.gmra.mxu0 %vm1565_vm0, %v3987_v57  ;;  %3712 = vmatmul.msk.bf16.gmra.mxu3 %vm1565_vm0, %v4034_v58  ;;  %v4949_v57 = vpop.f32.mrf.mxu3 }
 0x121   : > { %6311 = vst [vmem:[#allocation27_spill] sm:$0xff] %v4931_v62  ;;  %v4935_v15 = vpop.permute.xlu1 %855  ;;  %v4937_v3 = vpop.permute.xlu0 %850  ;;  %v1800_v62 = vadd.f32 %v1799_v60, %v4602_v43  ;;  %v566_v43 = vld [vmem:[%s6283_s2 + $0x328] sm:$0xff] }
 0x122   : > { %6312 = vst [vmem:[#allocation28_spill] sm:$0xff] %v4935_v15  ;;  %v2101_v15 = vmax.f32 %v1803_v59, 0.0  ;;  %v3988_v59 = vld [vmem:[%s6282_s1 + $0x80] sm:$0xff] }
 0x123   : > { %6313 = vst [vmem:[#allocation29_spill] sm:$0xff] %v4937_v3  ;;  %v1798_v3 = vadd.f32 %v1797_v21, %v4604_v44  ;;  %v564_v44 = vld [vmem:[%s6283_s2 + $0x318] sm:$0xff] }
 0x124   : > { %6314 = vst [vmem:[#allocation30_spill] sm:$0xff] %v4949_v57  ;;  %v2100_v57 = vmax.f32 %v1800_v62, 0.0 }
 0x125   : > { %v1804_v34 = vpop.f32.mrf.mxu0  ;;  %v2099_v21 = vmax.f32 %v1798_v3, 0.0 }
 0x126   : > { %1085 = vperm.xlu2 %4150, %v563_v8   ;;  %v1805_v58 = vadd.f32 %v1804_v34, %v4633_v56  ;;  %v1795_v8 = vadd.f32 %v4860_v24, %v4516_v5  ;;  %v565_v56 = vld [vmem:[%s6283_s2 + $0x320] sm:$0xff]  ;;  %v4035_v5 = vld [vmem:[%s6282_s1 + $0x1f8] sm:$0xff]  ;;  %v1793_v24 = vadd.f32 %v4835_v63, %v4583_v31  ;;  %v1788_v31 = vadd.f32 %v4783_v25, %v4503_v1  ;;  %v591_v1 = vld [vmem:[%s6283_s2 + $0x3f0] sm:$0xff] }
 0x127   : > { %1080 = vperm.xlu1 %4149, %v562_v29   ;;  %1075 = vperm.xlu0 %4148, %v561_v2   ;;  %v2221_v62 = vpack.c.bf16 %v2100_v57, %v2099_v21  ;;  %v575_v57 = vld [vmem:[%s6283_s2 + $0x370] sm:$0xff]  ;;  %v5010_v21 = vpop.f32.mrf.mxu1 }
 0x128   : > { %v2102_v14 = vmax.f32 %v1805_v58, 0.0  ;;  %v4953_v61 = vpop.permute.xlu2 %920  ;;  %v2098_v60 = vmax.f32 %v1795_v8, 0.0  ;;  %v4981_v29 = vpop.f32.mrf.mxu3  ;;  %v2097_v63 = vmax.f32 %v1793_v24, 0.0  ;;  %v2095_v25 = vmax.f32 %v1788_v31, 0.0  ;;  %6323 = vst [vmem:[#allocation39_spill] sm:$0xff] %v5010_v21 }
 0x129   : > { %6315 = vst [vmem:[#allocation31_spill] sm:$0xff] %v4953_v61  ;;  %v4956_v38 = vpop.permute.xlu1 %870  ;;  %v4958_v26 = vpop.permute.xlu0 %865 }
 0x12a   : > { %6316 = vst [vmem:[#allocation32_spill] sm:$0xff] %v4956_v38  ;;  %v2222_v41 = vpack.c.bf16 %v2102_v14, %v2101_v15  ;;  %v592_v14 = vld [vmem:[%s6283_s2 + $0x3f8] sm:$0xff] }
 0x12b   : > { %6317 = vst [vmem:[#allocation33_spill] sm:$0xff] %v4958_v26  ;;  %v580_v38 = vld [vmem:[%s6283_s2 + $0x398] sm:$0xff] }
 0x12c   : > { %2759 = vmatpush.bf16.msrb.mxu1 %v2222_v41  ;;  %v1790_v41 = vadd.f32 %v4808_v40, %v4585_v32  ;;  %6318 = vst [vmem:[#allocation34_spill] sm:$0xff] %v4981_v29  ;;  %v2220_v40 = vpack.c.bf16 %v2098_v60, %v2097_v63  ;;  %v576_v60 = vld [vmem:[%s6283_s2 + $0x378] sm:$0xff] }
 0x12d   : > { %v1807_v15 = vpop.f32.mrf.mxu0 }
 0x12e   : > { %1100 = vperm.xlu2 %4150, %v566_v43   ;;  %v2096_v32 = vmax.f32 %v1790_v41, 0.0  ;;  %v1808_v58 = vadd.f32 %v1807_v15, %v4631_v54  ;;  %v589_v41 = vld [vmem:[%s6283_s2 + $0x3e0] sm:$0xff] }
 0x12f   : > { %1095 = vperm.xlu1 %4149, %v565_v56   ;;  %1090 = vperm.xlu0 %4148, %v564_v44  }
 0x130   : > { %v4983_v2 = vpop.permute.xlu2 %935  ;;  %3666 = vmatmul.msk.bf16.gmra.mxu0 %vm1565_vm0, %v3988_v59  ;;  %3713 = vmatmul.msk.bf16.gmra.mxu3 %vm1565_vm0, %v4035_v5  ;;  %v2219_v56 = vpack.c.bf16 %v2096_v32, %v2095_v25  ;;  %v2103_v44 = vmax.f32 %v1808_v58, 0.0  ;;  %v5039_v58 = vpop.f32.mrf.mxu1  ;;  %v3716_v25 = vld [vmem:[%s6284_s3] sm:$0xf] }
 0x131   : > { %v4989_v3 = vpop.permute.xlu1 %885  ;;  %v4991_v34 = vpop.permute.xlu0 %880  ;;  %2760 = vmatpush.bf16.msrb.mxu1 %v2221_v62  ;;  %v3989_v62 = vld [vmem:[%s6282_s1 + $0x88] sm:$0xff]  ;;  %6326 = vst [vmem:[#allocation42_spill] sm:$0xff] %v5039_v58 }
 0x132   : > { %6319 = vst [vmem:[#allocation35_spill] sm:$0xff] %v4989_v3 }
 0x133   : > { %6320 = vst [vmem:[#allocation36_spill] sm:$0xff] %v4991_v34 }
 0x135   : > { %2761 = vmatpush.bf16.msrb.mxu1 %v2220_v40  ;;  %v1809_v8 = vpop.f32.mrf.mxu0 }
 0x136   : > { %1145 = vperm.xlu2 %4150, %v575_v57   ;;  %v1810_v43 = vadd.f32 %v1809_v8, %v4554_v20  ;;  %v590_v20 = vld [vmem:[%s6283_s2 + $0x3e8] sm:$0xff]  ;;  %v587_v57 = vld [vmem:[%s6283_s2 + $0x3d0] sm:$0xff] }
 0x137   : > { %1230 = vperm.xlu1 %4149, %v592_v14   ;;  %1225 = vperm.xlu0 %4148, %v591_v1   ;;  %v574_v14 = vld [vmem:[%s6283_s2 + $0x368] sm:$0xff]  ;;  %v573_v1 = vld [vmem:[%s6283_s2 + $0x360] sm:$0xff] }
 0x138   : > { %v2104_v59 = vmax.f32 %v1810_v43, 0.0  ;;  %v5004_v54 = vpop.permute.xlu2 %950 }
 0x139   : > { %v5006_v5 = vpop.permute.xlu1 %900  ;;  %v5008_v24 = vpop.permute.xlu0 %895  ;;  %2762 = vmatpush.bf16.msrb.mxu1 %v2219_v56 }
 0x13a   : > { %6321 = vst [vmem:[#allocation37_spill] sm:$0xff] %v5006_v5  ;;  %v5012_v15 = vpack.c.bf16 %v2104_v59, %v2103_v44 }
 0x13b   : > { %6322 = vst [vmem:[#allocation38_spill] sm:$0xff] %v5008_v24 }
 0x13d   : > { %2763 = vmatpush.bf16.msrb.mxu1 %v4765_v13  ;;  %v1812_v31 = vpop.f32.mrf.mxu0 }
 0x13e   : > { %1220 = vperm.xlu2 %4150, %v590_v20   ;;  %v1813_v13 = vadd.f32 %v1812_v31, %v4654_v6  ;;  %v4042_v6 = vld [vmem:[%s6284_s3 + $0x1c] sm:$0xf0] }
 0x13f   : > { %1215 = vperm.xlu1 %4149, %v589_v41   ;;  %1150 = vperm.xlu0 %4148, %v576_v60   ;;  %v3717_v44 = vor.u32 %v4042_v6, %v3716_v25  ;;  %v572_v41 = vld [vmem:[%s6283_s2 + $0x358] sm:$0xff]  ;;  %v586_v25 = vld [vmem:[%s6283_s2 + $0x3c8] sm:$0xff]  ;;  %v585_v6 = vld [vmem:[%s6283_s2 + $0x3c0] sm:$0xff] }
 0x140   : > { %3667 = vmatmul.msk.bf16.gmra.mxu0 %vm1565_vm0, %v3989_v62  ;;  %v5033_v40 = vpop.permute.xlu2 %965  ;;  %v2105_v43 = vmax.f32 %v1813_v13, 0.0  ;;  %v588_v62 = vld [vmem:[%s6283_s2 + $0x3d8] sm:$0xff] }
 0x141   : > { %v5028_v63 = vpop.permute.xlu1 %915  ;;  %v5030_v32 = vpop.permute.xlu0 %910  ;;  %2764 = vmatpush.bf16.msrb.mxu1 %v4711_v39 }
 0x142   : > { %6324 = vst [vmem:[#allocation40_spill] sm:$0xff] %v5028_v63  ;;  %v584_v63 = vld [vmem:[%s6283_s2 + $0x3b8] sm:$0xff] }
 0x143   : > { %6325 = vst [vmem:[#allocation41_spill] sm:$0xff] %v5030_v32 }
 0x145   : > { %2765 = vmatpush.bf16.msrb.mxu1 %v4659_v9  ;;  %v1814_v39 = vpop.f32.mrf.mxu0 }
 0x146   : > { %1205 = vperm.xlu2 %4150, %v587_v57   ;;  %v1815_v8 = vadd.f32 %v1814_v39, %v4652_v7  ;;  %v571_v7 = vld [vmem:[%s6283_s2 + $0x350] sm:$0xff]  ;;  %v5076_v57 = vpop.f32.mrf.mxu1 }
 0x147   : > { %1140 = vperm.xlu1 %4149, %v574_v14   ;;  %1135 = vperm.xlu0 %4148, %v573_v1   ;;  %v569_v1 = vld [vmem:[%s6283_s2 + $0x340] sm:$0xff] }
 0x148   : > { %v2106_v56 = vmax.f32 %v1815_v8, 0.0  ;;  %v5065_v60 = vpop.permute.xlu2 %980 }
 0x149   : > { %v5055_v59 = vpop.permute.xlu1 %930  ;;  %v5057_v9 = vpop.permute.xlu0 %925  ;;  %2766 = vmatpush.bf16.msrb.mxu1 %v4609_v46  ;;  %v3990_v46 = vld [vmem:[%s6282_s1 + $0x90] sm:$0xff] }
 0x14a   : > { %6327 = vst [vmem:[#allocation43_spill] sm:$0xff] %v5055_v59  ;;  %v5060_v20 = vpack.c.bf16 %v2106_v56, %v2105_v43  ;;  %v3748_v43 = vld [vmem:[%s6284_s3 + $0x40] sm:$0xf] }
 0x14b   : > { %6328 = vst [vmem:[#allocation44_spill] sm:$0xff] %v5057_v9  ;;  %v4050_v56 = vld [vmem:[%s6284_s3 + $0x5c] sm:$0xf0]  ;;  %v2358_v9 = vld [vmem:[%s6285_s4 + $0x78] sm:$0xff] }
 0x14c   : > { %2767 = vmatmul.bf16.vlgmr.msrb.gmra.mxu1 %v3717_v44 }
 0x14d   : > { %v1817_v31 = vpop.f32.mrf.mxu0 }
 0x14e   : > { %1130 = vperm.xlu2 %4150, %v572_v41   ;;  %v1818_v39 = vadd.f32 %v1817_v31, %v4579_v30 }
 0x14f   : > { %1125 = vperm.xlu1 %4149, %v571_v7   ;;  %1210 = vperm.xlu0 %4148, %v588_v62   ;;  %v5102_v7 = vpop.f32.mrf.mxu1 }
 0x150   : > { %3668 = vmatmul.msk.bf16.gmra.mxu0 %vm1565_vm0, %v3990_v46  ;;  %v5099_v44 = vpop.permute.xlu2 %995  ;;  %v2107_v41 = vmax.f32 %v1818_v39, 0.0  ;;  %6330 = vst [vmem:[#allocation46_spill] sm:$0xff] %v5102_v7  ;;  %v3749_v46 = vor.u32 %v4050_v56, %v3748_v43  ;;  %v3991_v39 = vld [vmem:[%s6282_s1 + $0x98] sm:$0xff] }
 0x151   : > { %v5079_v13 = vpop.permute.xlu1 %945  ;;  %v5081_v14 = vpop.permute.xlu0 %940  ;;  %6329 = vst [vmem:[#allocation45_spill] sm:$0xff] %v5099_v44  ;;  %v2346_v44 = vld [vmem:[%s6285_s4 + $0x18] sm:$0xff] }
 0x155   : > { %v1819_v8 = vpop.f32.mrf.mxu0 }
 0x156   : > { %1115 = vperm.xlu2 %4150, %v569_v1   ;;  %v1820_v30 = vadd.f32 %v1819_v8, %v4683_v19  ;;  %v583_v19 = vld [vmem:[%s6283_s2 + $0x3b0] sm:$0xff]  ;;  %v570_v1 = vld [vmem:[%s6283_s2 + $0x348] sm:$0xff] }
 0x157   : > { %1200 = vperm.xlu1 %4149, %v586_v25   ;;  %1195 = vperm.xlu0 %4148, %v585_v6   ;;  %v5129_v56 = vpop.f32.mrf.mxu1 }
 0x158   : > { %v2108_v62 = vmax.f32 %v1820_v30, 0.0  ;;  %v5122_v6 = vpop.permute.xlu2 %1010  ;;  %v581_v30 = vld [vmem:[%s6283_s2 + $0x3a0] sm:$0xff] }
 0x159   : > { %v5104_v31 = vpop.permute.xlu1 %960  ;;  %v5106_v29 = vpop.permute.xlu0 %955  ;;  %6331 = vst [vmem:[#allocation47_spill] sm:$0xff] %v5122_v6 }
 0x15a   : > { %v5108_v61 = vpack.c.bf16 %v2108_v62, %v2107_v41  ;;  %v567_v62 = vld [vmem:[%s6283_s2 + $0x330] sm:$0xff] }
 0x15c   : > { %2772 = vmatmul.bf16.gmra.mxu1 %v3749_v46 }
 0x15d   : > { %v1822_v25 = vpop.f32.mrf.mxu0 }
 0x15e   : > { %1190 = vperm.xlu2 %4150, %v584_v63   ;;  %v1823_v41 = vadd.f32 %v1822_v25, %v4681_v18  ;;  %v568_v63 = vld [vmem:[%s6283_s2 + $0x338] sm:$0xff] }
 0x15f   : > { %1185 = vperm.xlu1 %4149, %v583_v19   ;;  %1120 = vperm.xlu0 %4148, %v570_v1   ;;  %v3780_v19 = vld [vmem:[%s6284_s3 + $0x80] sm:$0xf] }
 0x160   : > { %3669 = vmatmul.msk.bf16.gmra.mxu0 %vm1565_vm0, %v3991_v39  ;;  %v4058_v1 = vld [vmem:[%s6284_s3 + $0x9c] sm:$0xf0]  ;;  %v2109_v39 = vmax.f32 %v1823_v41, 0.0  ;;  %v5152_v32 = vpop.permute.xlu2 %1025  ;;  %v582_v41 = vld [vmem:[%s6283_s2 + $0x3a8] sm:$0xff] }
 0x161   : > { %v5125_v8 = vpop.permute.xlu1 %975  ;;  %v5127_v43 = vpop.permute.xlu0 %970  ;;  %v3781_v34 = vor.u32 %v4058_v1, %v3780_v19  ;;  %6332 = vst [vmem:[#allocation48_spill] sm:$0xff] %v5152_v32  ;;  %v2343_v19 = vld [vmem:[%s6285_s4] sm:$0xff] }
 0x165   : > { %v1824_v46 = vpop.f32.mrf.mxu0 }
 0x166   : > { %1175 = vperm.xlu2 %4150, %v581_v30   ;;  %v1825_v18 = vadd.f32 %v1824_v46, %v4600_v42  ;;  %v5159_v30 = vpop.f32.mrf.mxu1  ;;  %v579_v42 = vld [vmem:[%s6283_s2 + $0x390] sm:$0xff] }
 0x167   : > { %1110 = vperm.xlu1 %4149, %v568_v63   ;;  %1105 = vperm.xlu0 %4148, %v567_v62   ;;  %v3992_v63 = vld [vmem:[%s6282_s1 + $0xa0] sm:$0xff] }
 0x168   : > { %v2110_v25 = vmax.f32 %v1825_v18, 0.0  ;;  %v5180_v1 = vpop.permute.xlu2 %1040  ;;  %v578_v18 = vld [vmem:[%s6283_s2 + $0x388] sm:$0xff] }
 0x169   : > { %v5148_v3 = vpop.permute.xlu1 %990  ;;  %v5150_v24 = vpop.permute.xlu0 %985  ;;  %6335 = vst [vmem:[#allocation51_spill] sm:$0xff] %v5180_v1 }
 0x16a   : > { %v5154_v5 = vpack.c.bf16 %v2110_v25, %v2109_v39  ;;  %v3812_v25 = vld [vmem:[%s6284_s3 + $0xc0] sm:$0xf] }
 0x16c   : > { %2777 = vmatmul.bf16.gmra.mxu1 %v3781_v34 }
 0x16d   : > { %v5170_v62 = vpop.f32.mrf.mxu0 }
 0x16e   : > { %1170 = vperm.xlu2 %4150, %v580_v38   ;;  %v577_v38 = vld [vmem:[%s6283_s2 + $0x380] sm:$0xff] }
 0x16f   : > { %1165 = vperm.xlu1 %4149, %v579_v42   ;;  %1180 = vperm.xlu0 %4148, %v582_v41   ;;  %v4066_v42 = vld [vmem:[%s6284_s3 + $0xdc] sm:$0xf0]  ;;  %v5196_v41 = vpop.f32.mrf.mxu1 }
 0x170   : > { %3670 = vmatmul.msk.bf16.gmra.mxu0 %vm1565_vm0, %v3992_v63  ;;  %v3813_v63 = vor.u32 %v4066_v42, %v3812_v25  ;;  %v5216_v25 = vpop.permute.xlu2 %1055 }
 0x171   : > { %v5173_v34 = vpop.permute.xlu1 %1005  ;;  %v5175_v46 = vpop.permute.xlu0 %1000  ;;  %6338 = vst [vmem:[#allocation54_spill] sm:$0xff] %v5216_v25 }
 0x172   : > { %6333 = vst [vmem:[#allocation49_spill] sm:$0xff] %v5173_v34  ;;  %v2345_v34 = vld [vmem:[%s6285_s4 + $0x10] sm:$0xff] }
 0x173   : > { %6334 = vst [vmem:[#allocation50_spill] sm:$0xff] %v5175_v46 }
 0x175   : > { %v5188_v39 = vpop.f32.mrf.mxu0 }
 0x176   : > { %2361 = vperm.xlu2 %4150, %v2343_v19   ;;  %v2344_v19 = vld [vmem:[%s6285_s4 + $0x8] sm:$0xff] }
 0x177   : > { %1160 = vperm.xlu1 %4149, %v578_v18   ;;  %1155 = vperm.xlu0 %4148, %v577_v38   ;;  %v3993_v18 = vld [vmem:[%s6282_s1 + $0xa8] sm:$0xff]  ;;  %v5218_v42 = vpop.f32.mrf.mxu1 }
 0x179   : > { %v5198_v26 = vpop.permute.xlu1 %1020  ;;  %v5200_v46 = vpop.permute.xlu0 %1015 }
 0x17a   : > { %6336 = vst [vmem:[#allocation52_spill] sm:$0xff] %v5198_v26  ;;  %v2348_v26 = vld [vmem:[%s6285_s4 + $0x28] sm:$0xff] }
 0x17b   : > { %6337 = vst [vmem:[#allocation53_spill] sm:$0xff] %v5200_v46  ;;  %v2349_v46 = vld [vmem:[%s6285_s4 + $0x30] sm:$0xff] }
 0x17c   : > { %2782 = vmatmul.bf16.gmra.mxu1 %v3813_v63 }
 0x17d   : > { %v5214_v38 = vpop.f32.mrf.mxu0 }
 0x17e   : > { %2376 = vperm.xlu2 %4150, %v2346_v44   ;;  %v2347_v44 = vld [vmem:[%s6285_s4 + $0x20] sm:$0xff] }
 0x17f   : > { %2371 = vperm.xlu1 %4149, %v2345_v34   ;;  %2366 = vperm.xlu0 %4148, %v2344_v19   ;;  %v3844_v19 = vld [vmem:[%s6284_s3 + $0x100] sm:$0xf]  ;;  %v5248_v25 = vpop.f32.mrf.mxu1 }
 0x180   : > { %3671 = vmatmul.msk.bf16.gmra.mxu0 %vm1565_vm0, %v3993_v18  ;;  %v4074_v18 = vld [vmem:[%s6284_s3 + $0x11c] sm:$0xf0] }
 0x181   : > { %v5221_v63 = vpop.permute.xlu1 %1035  ;;  %v5223_v6 = vpop.permute.xlu0 %1030  ;;  %v3845_v32 = vor.u32 %v4074_v18, %v3844_v19 }
 0x182   : > { %6339 = vst [vmem:[#allocation55_spill] sm:$0xff] %v5221_v63 }
 0x183   : > { %6340 = vst [vmem:[#allocation56_spill] sm:$0xff] %v5223_v6  ;;  %v5242_v6 = vpop.permute.xlu2 %1070 }
 0x184   : > { %6341 = vst [vmem:[#allocation57_spill] sm:$0xff] %v5242_v6 }
 0x185   : > { %v5234_v34 = vpop.f32.mrf.mxu0 }
 0x186   : > { %2391 = vperm.xlu2 %4150, %v2349_v46   ;;  %v2351_v46 = vld [vmem:[%s6285_s4 + $0x40] sm:$0xff] }
 0x187   : > { %2386 = vperm.xlu1 %4149, %v2348_v26   ;;  %2381 = vperm.xlu0 %4148, %v2347_v44   ;;  %v2350_v26 = vld [vmem:[%s6285_s4 + $0x38] sm:$0xff]  ;;  %v3994_v44 = vld [vmem:[%s6282_s1 + $0xb0] sm:$0xff]  ;;  %v5270_v6 = vpop.f32.mrf.mxu1 }
 0x189   : > { %v5244_v63 = vpop.permute.xlu1 %1050  ;;  %v5246_v1 = vpop.permute.xlu0 %1045 }
 0x18a   : > { %6342 = vst [vmem:[#allocation58_spill] sm:$0xff] %v5244_v63 }
 0x18b   : > { %6343 = vst [vmem:[#allocation59_spill] sm:$0xff] %v5246_v1  ;;  %v1086_v63 = vpop.permute.xlu2 %1085  ;;  %v2355_v1 = vld [vmem:[%s6285_s4 + $0x60] sm:$0xff] }
 0x18c   : > { %2787 = vmatmul.bf16.gmra.mxu1 %v3845_v32 }
 0x18d   : > { %v1837_v19 = vpop.f32.mrf.mxu0 }
 0x18e   : > { %2406 = vperm.xlu2 %4150, %v2352_v23   ;;  %v2353_v23 = vld [vmem:[%s6285_s4 + $0x50] sm:$0xff] }
 0x18f   : > { %2401 = vperm.xlu1 %4149, %v2351_v46   ;;  %2396 = vperm.xlu0 %4148, %v2350_v26   ;;  %v3876_v26 = vld [vmem:[%s6284_s3 + $0x140] sm:$0xf] }
 0x190   : > { %3672 = vmatmul.msk.bf16.gmra.mxu0 %vm1565_vm0, %v3994_v44  ;;  %v4082_v44 = vld [vmem:[%s6284_s3 + $0x15c] sm:$0xf0] }
 0x191   : > { %v5263_v18 = vpop.permute.xlu1 %1065  ;;  %v5265_v32 = vpop.permute.xlu0 %1060 }
 0x192   : > { %6344 = vst [vmem:[#allocation60_spill] sm:$0xff] %v5263_v18 }
 0x193   : > { %6345 = vst [vmem:[#allocation61_spill] sm:$0xff] %v5265_v32  ;;  %v3877_v32 = vor.u32 %v4082_v44, %v3876_v26 }
 0x195   : > { %v1839_v46 = vpop.f32.mrf.mxu0 }
 0x196   : > { %2421 = vperm.xlu2 %4150, %v2355_v1   ;;  %v2357_v1 = vld [vmem:[%s6285_s4 + $0x70] sm:$0xff] }
 0x197   : > { %2416 = vperm.xlu1 %4149, %v2354_v16   ;;  %2411 = vperm.xlu0 %4148, %v2353_v23   ;;  %v2356_v16 = vld [vmem:[%s6285_s4 + $0x68] sm:$0xff]  ;;  %v5299_v23 = vpop.f32.mrf.mxu1 }
 0x199   : > { %v1081_v18 = vpop.permute.xlu1 %1080  ;;  %v1076_v11 = vpop.permute.xlu0 %1075 }
 0x19a   : > { %v2010_v50 = vadd.f32 %v4800_v35, %v1081_v18  ;;  %v2008_v21 = vadd.f32 %v4763_v12, %v1076_v11  ;;  %v3995_v35 = vld [vmem:[%s6282_s1 + $0xb8] sm:$0xff]  ;;  %v1101_v12 = vpop.permute.xlu2 %1100  ;;  %v2013_v18 = vadd.f32 %v4837_v0, %v1086_v63  ;;  %v3169_v0 = vld [vmem:[%s6286_s5 + $0x10] sm:$0xff]  ;;  %v3167_v63 = vld [vmem:[%s6286_s5] sm:$0xff] }
 0x19c   : > { %v2184_v58 = vmax.f32 %v2010_v50, 0.0  ;;  %v2183_v59 = vmax.f32 %v2008_v21, 0.0  ;;  %2792 = vmatmul.bf16.gmra.mxu1 %v3877_v32  ;;  %v2020_v50 = vadd.f32 %v4920_v49, %v1101_v12  ;;  %v2185_v44 = vmax.f32 %v2013_v18, 0.0 }
 0x19d   : > { %v1842_v11 = vpop.f32.mrf.mxu0 }
 0x19e   : > { %v5302_v21 = vpack.c.bf16 %v2184_v58, %v2183_v59  ;;  %2436 = vperm.xlu2 %4150, %v2358_v9   ;;  %v2188_v45 = vmax.f32 %v2020_v50, 0.0  ;;  %v1843_v49 = vadd.f32 %v1842_v11, %v4758_v22  ;;  %v3168_v9 = vld [vmem:[%s6286_s5 + $0x8] sm:$0xff]  ;;  %v1840_v22 = vadd.f32 %v1839_v46, %v4650_v4 }
 0x19f   : > { %2431 = vperm.xlu1 %4149, %v2357_v1   ;;  %2426 = vperm.xlu0 %4148, %v2356_v16   ;;  %v5330_v12 = vpop.f32.mrf.mxu1  ;;  %v3172_v46 = vld [vmem:[%s6286_s5 + $0x28] sm:$0xff] }
 0x1a0   : > { %6346 = vst [vmem:[#allocation62_spill] sm:$0xff] %v5302_v21  ;;  %3673 = vmatmul.msk.bf16.gmra.mxu0 %vm1565_vm0, %v3995_v35  ;;  %v1838_v35 = vadd.f32 %v1837_v19, %v4735_v51  ;;  %v2117_v11 = vmax.f32 %v1843_v49, 0.0  ;;  %v2116_v4 = vmax.f32 %v1840_v22, 0.0  ;;  %v3171_v51 = vld [vmem:[%s6286_s5 + $0x20] sm:$0xff] }
 0x1a1   : > { %v1096_v32 = vpop.permute.xlu1 %1095  ;;  %v1091_v26 = vpop.permute.xlu0 %1090 }
 0x1a2   : > { %v2018_v47 = vadd.f32 %v4897_v48, %v1096_v32  ;;  %v2015_v7 = vadd.f32 %v4862_v33, %v1091_v26  ;;  %v3908_v33 = vld [vmem:[%s6284_s3 + $0x180] sm:$0xf]  ;;  %v1835_v32 = vadd.f32 %v5234_v34, %v4737_v52  ;;  %v2115_v26 = vmax.f32 %v1838_v35, 0.0  ;;  %v3170_v52 = vld [vmem:[%s6286_s5 + $0x18] sm:$0xff] }
 0x1a3   : > { %v4090_v48 = vld [vmem:[%s6284_s3 + $0x19c] sm:$0xf0] }
 0x1a4   : > { %v2187_v58 = vmax.f32 %v2018_v47, 0.0  ;;  %v2186_v59 = vmax.f32 %v2015_v7, 0.0  ;;  %v3909_v50 = vor.u32 %v4090_v48, %v3908_v33  ;;  %v3996_v34 = vld [vmem:[%s6282_s1 + $0xc0] sm:$0xff] }
 0x1a5   : > { %v1844_v1 = vpop.f32.mrf.mxu0  ;;  %v3940_v33 = vld [vmem:[%s6284_s3 + $0x1c0] sm:$0xf] }
 0x1a6   : > { %v5324_v47 = vpack.c.bf16 %v2188_v45, %v2187_v58  ;;  %v5326_v7 = vpack.c.bf16 %v2186_v59, %v2185_v44  ;;  %3195 = vperm.xlu2 %4150, %v3169_v0   ;;  %v1845_v16 = vadd.f32 %v1844_v1, %v4756_v10  ;;  %v1833_v10 = vadd.f32 %v5214_v38, %v4627_v53  ;;  %v3174_v1 = vld [vmem:[%s6286_s5 + $0x38] sm:$0xff]  ;;  %v4098_v48 = vld [vmem:[%s6284_s3 + $0x1dc] sm:$0xf0] }
 0x1a7   : > { %3190 = vperm.xlu1 %4149, %v3168_v9   ;;  %3185 = vperm.xlu0 %4148, %v3167_v63   ;;  %v1830_v44 = vadd.f32 %v5188_v39, %v4704_v55  ;;  %v2114_v53 = vmax.f32 %v1835_v32, 0.0  ;;  %v2229_v38 = vpack.c.bf16 %v2116_v4, %v2115_v26  ;;  %v1828_v0 = vadd.f32 %v5170_v62, %v4706_v37  ;;  %v1962_v59 = vpop.f32.mrf.mxu1  ;;  %v3175_v63 = vld [vmem:[%s6286_s5 + $0x40] sm:$0xff]  ;;  %v3173_v37 = vld [vmem:[%s6286_s5 + $0x30] sm:$0xff]  ;;  %v3176_v4 = vld [vmem:[%s6286_s5 + $0x48] sm:$0xff] }
 0x1a8   : > { %6347 = vst [vmem:[#allocation63_spill] sm:$0xff] %v5324_v47  ;;  %v2118_v18 = vmax.f32 %v1845_v16, 0.0  ;;  %v2113_v49 = vmax.f32 %v1833_v10, 0.0 }
 0x1a9   : > { %6348 = vst [vmem:[#allocation64_spill] sm:$0xff] %v5326_v7  ;;  %v2112_v58 = vmax.f32 %v1830_v44, 0.0  ;;  %v2111_v55 = vmax.f32 %v1828_v0, 0.0  ;;  %v1948_v0 = vadd.f32 %v5196_v41, %v5106_v29  ;;  %v3182_v29 = vld [vmem:[%s6286_s5 + $0x78] sm:$0xff] }
 0x1aa   : > { %v2230_v45 = vpack.c.bf16 %v2118_v18, %v2117_v11  ;;  %v2228_v9 = vpack.c.bf16 %v2114_v53, %v2113_v49  ;;  %v3941_v11 = vor.u32 %v4098_v48, %v3940_v33  ;;  %v5439_v33 = vpop.f32.mrf.mxu2  ;;  %v6352_v48 = vld [vmem:[#allocation14_spill] sm:$0xff] }
 0x1ab   : > { %v2227_v22 = vpack.c.bf16 %v2112_v58, %v2111_v55  ;;  %v2159_v41 = vmax.f32 %v1948_v0, 0.0  ;;  %v6359_v0 = vld [vmem:[#allocation17_spill] sm:$0xff] }
 0x1ac   : > { %2797 = vmatmul.bf16.gmra.mxu1 %v3909_v50  ;;  %2808 = vmatpush.bf16.msrb.mxu2 %v2230_v45  ;;  %v3178_v50 = vld [vmem:[%s6286_s5 + $0x58] sm:$0xff]  ;;  %v3997_v45 = vld [vmem:[%s6282_s1 + $0xc8] sm:$0xff] }
 0x1ad   : > { %v1847_v19 = vpop.f32.mrf.mxu0 }
 0x1ae   : > { %3210 = vperm.xlu2 %4150, %v3172_v46   ;;  %v1848_v39 = vadd.f32 %v1847_v19, %v4677_v17  ;;  %v1963_v46 = vadd.f32 %v1962_v59, %v5150_v24  ;;  %v3180_v24 = vld [vmem:[%s6286_s5 + $0x68] sm:$0xff]  ;;  %v1953_v19 = vadd.f32 %v5248_v25, %v5033_v40 }
 0x1af   : > { %3205 = vperm.xlu1 %4149, %v3171_v51   ;;  %3200 = vperm.xlu0 %4148, %v3170_v52   ;;  %v1964_v32 = vpop.f32.mrf.mxu1  ;;  %v1960_v51 = vadd.f32 %v5330_v12, %v5065_v60  ;;  %v3179_v60 = vld [vmem:[%s6286_s5 + $0x60] sm:$0xff]  ;;  %v1955_v12 = vadd.f32 %v5270_v6, %v5127_v43  ;;  %v1950_v6 = vadd.f32 %v5218_v42, %v5104_v31 }
 0x1b0   : > { %3674 = vmatmul.msk.bf16.gmra.mxu0 %vm1565_vm0, %v3996_v34  ;;  %2809 = vmatpush.bf16.msrb.mxu2 %v2229_v38  ;;  %v2119_v16 = vmax.f32 %v1848_v39, 0.0  ;;  %v1965_v10 = vadd.f32 %v1964_v32, %v5148_v3  ;;  %v2165_v52 = vmax.f32 %v1963_v46, 0.0  ;;  %v3181_v3 = vld [vmem:[%s6286_s5 + $0x70] sm:$0xff]  ;;  %v5415_v38 = vpop.f32.mrf.mxu3  ;;  %v2161_v43 = vmax.f32 %v1953_v19, 0.0  ;;  %v6354_v32 = vld [vmem:[#allocation43_spill] sm:$0xff] }
 0x1b1   : > { %v2164_v25 = vmax.f32 %v1960_v51, 0.0  ;;  %6349 = vst [vmem:[#allocation65_spill] sm:$0xff] %v5415_v38  ;;  %v2162_v59 = vmax.f32 %v1955_v12, 0.0  ;;  %v1943_v31 = vadd.f32 %v5129_v56, %v5079_v13  ;;  %v2160_v42 = vmax.f32 %v1950_v6, 0.0  ;;  %v6351_v13 = vld [vmem:[#allocation46_spill] sm:$0xff]  ;;  %v6358_v12 = vld [vmem:[#allocation9_spill] sm:$0xff] }
 0x1b2   : > { %v2166_v34 = vmax.f32 %v1965_v10, 0.0  ;;  %v1940_v56 = vadd.f32 %v6351_v13, %v5081_v14  ;;  %v6356_v14 = vld [vmem:[#allocation44_spill] sm:$0xff]  ;;  %v5506_v13 = vpop.permute.xlu1 %1230 }
 0x1b3   : > { %v2252_v39 = vpack.c.bf16 %v2162_v59, %v2161_v43 }
 0x1b4   : > { %2810 = vmatpush.bf16.msrb.mxu2 %v2228_v9  ;;  %v2156_v10 = vmax.f32 %v1940_v56, 0.0 }
 0x1b5   : > { %v1849_v62 = vpop.f32.mrf.mxu0 }
 0x1b6   : > { %3225 = vperm.xlu2 %4150, %v3175_v63   ;;  %v1850_v17 = vadd.f32 %v1849_v62, %v4791_v28  ;;  %v3177_v28 = vld [vmem:[%s6286_s5 + $0x50] sm:$0xff]  ;;  %v1945_v63 = vadd.f32 %v5159_v30, %v5004_v54  ;;  %v2157_v54 = vmax.f32 %v1943_v31, 0.0  ;;  %v1938_v62 = vadd.f32 %v5076_v57, %v4983_v2  ;;  %v4062_v31 = vld [vmem:[%s6284_s3 + $0xc4] sm:$0xf] }
 0x1b7   : > { %3220 = vperm.xlu1 %4149, %v3174_v1   ;;  %3215 = vperm.xlu0 %4148, %v3173_v37   ;;  %v2251_v1 = vpack.c.bf16 %v2160_v42, %v2159_v41  ;;  %v6353_v2 = vld [vmem:[#allocation13_spill] sm:$0xff]  ;;  %v3814_v41 = vld [vmem:[%s6284_s3 + $0xe0] sm:$0xf0] }
 0x1b8   : > { %v2120_v35 = vmax.f32 %v1850_v17, 0.0  ;;  %2811 = vmatpush.bf16.msrb.mxu2 %v2227_v22  ;;  %v2158_v30 = vmax.f32 %v1945_v63, 0.0  ;;  %v5435_v37 = vpop.f32.mrf.mxu3  ;;  %v4046_v22 = vld [vmem:[%s6284_s3 + $0x44] sm:$0xf] }
 0x1b9   : > { %6350 = vst [vmem:[#allocation66_spill] sm:$0xff] %v5435_v37 }
 0x1ba   : > { %v5370_v18 = vpack.c.bf16 %v2120_v35, %v2119_v16  ;;  %v3750_v16 = vld [vmem:[%s6284_s3 + $0x60] sm:$0xf0] }
 0x1bc   : > { %2802 = vmatmul.bf16.gmra.mxu1 %v3941_v11  ;;  %2812 = vmatpush.bf16.msrb.mxu2 %v5154_v5  ;;  %v1958_v5 = vadd.f32 %v5299_v23, %v5125_v8  ;;  %v4038_v8 = vld [vmem:[%s6284_s3 + $0x4] sm:$0xf]  ;;  %v2250_v11 = vpack.c.bf16 %v2158_v30, %v2157_v54  ;;  %v5501_v30 = vpop.permute.xlu2 %1145 }
 0x1bd   : > { %v1852_v26 = vpop.f32.mrf.mxu0  ;;  %v3718_v23 = vld [vmem:[%s6284_s3 + $0x20] sm:$0xf0] }
 0x1be   : > { %3240 = vperm.xlu2 %4150, %v3178_v50   ;;  %v2163_v40 = vmax.f32 %v1958_v5, 0.0  ;;  %v3721_v53 = vor.u32 %v4038_v8, %v3718_v23  ;;  %v2155_v50 = vmax.f32 %v1938_v62, 0.0 }
 0x1bf   : > { %3235 = vperm.xlu1 %4149, %v3177_v28   ;;  %3230 = vperm.xlu0 %4148, %v3176_v4   ;;  %v6355_v28 = vld [vmem:[#allocation42_spill] sm:$0xff] }
 0x1c0   : > { %3675 = vmatmul.msk.bf16.gmra.mxu0 %vm1565_vm0, %v3997_v45  ;;  %2813 = vmatpush.bf16.msrb.mxu2 %v5108_v61  ;;  %v1853_v61 = vadd.f32 %v1852_v26, %v4789_v27  ;;  %v2254_v27 = vpack.c.bf16 %v2166_v34, %v2165_v52  ;;  %v2253_v9 = vpack.c.bf16 %v2164_v25, %v2163_v40  ;;  %v6357_v45 = vld [vmem:[#allocation39_spill] sm:$0xff]  ;;  %v5457_v19 = vpop.f32.mrf.mxu3 }
 0x1c1   : > { %v1935_v4 = vadd.f32 %v6355_v28, %v6354_v32  ;;  %v1933_v46 = vadd.f32 %v6357_v45, %v6356_v14  ;;  %v3753_v26 = vor.u32 %v4046_v22, %v3750_v16  ;;  %v4054_v25 = vld [vmem:[%s6284_s3 + $0x84] sm:$0xf]  ;;  %v5519_v16 = vpop.permute.xlu0 %1225 }
 0x1c2   : > { %v2121_v49 = vmax.f32 %v1853_v61, 0.0  ;;  %v5459_v61 = vpop.f32.mrf.mxu2  ;;  %v3846_v22 = vld [vmem:[%s6284_s3 + $0x120] sm:$0xf0] }
 0x1c3   : > { %v2154_v34 = vmax.f32 %v1935_v4, 0.0 }
 0x1c4   : > { %2814 = vmatpush.bf16.msrb.mxu2 %v5060_v20 }
 0x1c5   : > { %v1854_v44 = vpop.f32.mrf.mxu0 }
 0x1c6   : > { %3255 = vperm.xlu2 %4150, %v3181_v3   ;;  %v1855_v20 = vadd.f32 %v1854_v44, %v4702_v36  ;;  %v2153_v3 = vmax.f32 %v1933_v46, 0.0 }
 0x1c7   : > { %3250 = vperm.xlu1 %4149, %v3180_v24   ;;  %3245 = vperm.xlu0 %4148, %v3179_v60   ;;  %v2249_v24 = vpack.c.bf16 %v2156_v10, %v2155_v50  ;;  %v3999_v60 = vld [vmem:[%s6282_s1 + $0xd8] sm:$0xff]  ;;  %v4078_v10 = vld [vmem:[%s6284_s3 + $0x144] sm:$0xf] }
 0x1c8   : > { %v2122_v58 = vmax.f32 %v1855_v20, 0.0  ;;  %2815 = vmatpush.bf16.msrb.mxu2 %v5012_v15  ;;  %v3998_v15 = vld [vmem:[%s6282_s1 + $0xd0] sm:$0xff]  ;;  %v2248_v23 = vpack.c.bf16 %v2154_v34, %v2153_v3  ;;  %v5472_v20 = vpop.f32.mrf.mxu3 }
 0x1c9   : > { %v5532_v14 = vpop.permute.xlu0 %1150 }
 0x1ca   : > { %v5422_v36 = vpack.c.bf16 %v2122_v58, %v2121_v49 }
 0x1cb   : > { %2816 = vmatmul.bf16.vlgmr.msrb.gmra.mxu2 %v3721_v53  ;;  %v5474_v53 = vpop.f32.mrf.mxu2 }
 0x1cc   : > { %2955 = vmatpush.bf16.msra.mxu2 %v2254_v27  ;;  %v3782_v27 = vld [vmem:[%s6284_s3 + $0xa0] sm:$0xf0] }
 0x1cd   : > { %v1857_v55 = vpop.f32.mrf.mxu0  ;;  %v3785_v58 = vor.u32 %v4054_v25, %v3782_v27 }
 0x1ce   : > { %v1858_v17 = vadd.f32 %v1857_v55, %v6352_v48  ;;  %v3817_v55 = vor.u32 %v4062_v31, %v3814_v41  ;;  %v6364_v41 = vld [vmem:[#allocation23_spill] sm:$0xff] }
 0x1cf   : > { %3260 = vperm.xlu0 %4148, %v3182_v29  }
 0x1d0   : > { %2956 = vmatpush.bf16.msra.mxu2 %v2253_v9  ;;  %3676 = vmatmul.msk.bf16.gmra.mxu0 %vm1565_vm0, %v3998_v15  ;;  %v2123_v5 = vmax.f32 %v1858_v17, 0.0  ;;  %v4000_v9 = vld [vmem:[%s6282_s1 + $0xe0] sm:$0xff]  ;;  %v5484_v29 = vpop.f32.mrf.mxu3 }
 0x1d1   : > { %v4070_v17 = vld [vmem:[%s6284_s3 + $0x104] sm:$0xf] }
 0x1d2   : > { %v3849_v50 = vor.u32 %v4070_v17, %v3846_v22 }
 0x1d3   : > { %v5486_v15 = vpop.f32.mrf.mxu2 }
 0x1d4   : > { %2957 = vmatpush.bf16.msra.mxu2 %v2252_v39 }
 0x1d5   : > { %v1859_v35 = vpop.f32.mrf.mxu0 }
 0x1d6   : > { %v1860_v57 = vadd.f32 %v1859_v35, %v6353_v2  ;;  %v5523_v2 = vpop.permute.xlu1 %1215 }
 0x1d8   : > { %2958 = vmatpush.bf16.msra.mxu2 %v2251_v1  ;;  %v2124_v51 = vmax.f32 %v1860_v57, 0.0  ;;  %v5497_v39 = vpop.f32.mrf.mxu3  ;;  %v4001_v1 = vld [vmem:[%s6282_s1 + $0xe8] sm:$0xff]  ;;  %v4002_v57 = vld [vmem:[%s6282_s1 + $0xf0] sm:$0xff] }
 0x1da   : > { %v5455_v52 = vpack.c.bf16 %v2124_v51, %v2123_v5 }
 0x1db   : > { %2821 = vmatmul.bf16.gmra.mxu2 %v3753_v26  ;;  %v5499_v54 = vpop.f32.mrf.mxu2  ;;  %v3878_v26 = vld [vmem:[%s6284_s3 + $0x160] sm:$0xf0] }
 0x1dc   : > { %2959 = vmatpush.bf16.msra.mxu2 %v2250_v11  ;;  %v5521_v11 = vpop.permute.xlu2 %1220  ;;  %v3881_v51 = vor.u32 %v4078_v10, %v3878_v26 }
 0x1dd   : > { %v1862_v8 = vpop.f32.mrf.mxu0 }
 0x1de   : > { %v1863_v40 = vadd.f32 %v1862_v8, %v6358_v12  ;;  %v5537_v46 = vpop.permute.xlu1 %1140 }
 0x1e0   : > { %2960 = vmatpush.bf16.msra.mxu2 %v2249_v24  ;;  %3677 = vmatmul.msk.bf16.gmra.mxu0 %vm1565_vm0, %v3999_v60  ;;  %v2125_v6 = vmax.f32 %v1863_v40, 0.0  ;;  %v5509_v56 = vpop.f32.mrf.mxu3  ;;  %v5549_v24 = vpop.permute.xlu0 %1135 }
 0x1e1   : > { %v5551_v60 = vpop.f32.mrf.mxu1 }
 0x1e3   : > { %v5511_v48 = vpop.f32.mrf.mxu2 }
 0x1e4   : > { %2961 = vmatpush.bf16.msra.mxu2 %v2248_v23  ;;  %v5534_v45 = vpop.permute.xlu2 %1205  ;;  %v4003_v23 = vld [vmem:[%s6282_s1 + $0xf8] sm:$0xff] }
 0x1e5   : > { %v1864_v44 = vpop.f32.mrf.mxu0 }
 0x1e6   : > { %v1865_v49 = vadd.f32 %v1864_v44, %v6359_v0  ;;  %v5558_v40 = vpop.permute.xlu1 %1125 }
 0x1e8   : > { %v2126_v43 = vmax.f32 %v1865_v49, 0.0  ;;  %v5528_v28 = vpop.f32.mrf.mxu3  ;;  %v5565_v44 = vpop.permute.xlu0 %1210 }
 0x1e9   : > { %v5567_v0 = vpop.f32.mrf.mxu1 }
 0x1ea   : > { %v5477_v59 = vpack.c.bf16 %v2126_v43, %v2125_v6  ;;  %v4086_v43 = vld [vmem:[%s6284_s3 + $0x184] sm:$0xf] }
 0x1eb   : > { %2826 = vmatmul.bf16.gmra.mxu2 %v3785_v58  ;;  %v5530_v4 = vpop.f32.mrf.mxu2  ;;  %v6363_v58 = vld [vmem:[#allocation22_spill] sm:$0xff] }
 0x1ec   : > { %v5553_v8 = vpop.permute.xlu2 %1130 }
 0x1ed   : > { %v5482_v63 = vpop.f32.mrf.mxu0 }
 0x1f0   : > { %3678 = vmatmul.msk.bf16.gmra.mxu0 %vm1565_vm0, %v4000_v9  ;;  %v5545_v34 = vpop.f32.mrf.mxu3  ;;  %v3910_v9 = vld [vmem:[%s6284_s3 + $0x1a0] sm:$0xf0] }
 0x1f1   : > { %6360 = vst [vmem:[#allocation46_spill] sm:$0xff] %v5545_v34  ;;  %v3913_v22 = vor.u32 %v4086_v43, %v3910_v9  ;;  %v6369_v34 = vld [vmem:[#allocation20_spill] sm:$0xff]  ;;  %v4004_v43 = vld [vmem:[%s6282_s1 + $0x100] sm:$0xff]  ;;  %v5590_v9 = vpop.permute.xlu0 %1195 }
 0x1f3   : > { %v5547_v3 = vpop.f32.mrf.mxu2 }
 0x1f4   : > { %v5569_v49 = vpop.permute.xlu2 %1115 }
 0x1f5   : > { %v5495_v42 = vpop.f32.mrf.mxu0  ;;  %6362 = vst [vmem:[#allocation13_spill] sm:$0xff] %v5569_v49  ;;  %v6437_v49 = vld [vmem:[#allocation35_spill] sm:$0xff] }
 0x1f8   : > { %v5561_v25 = vpop.f32.mrf.mxu3 }
 0x1f9   : > { %6361 = vst [vmem:[#allocation14_spill] sm:$0xff] %v5561_v25 }
 0x1fb   : > { %2831 = vmatmul.bf16.gmra.mxu2 %v3817_v55  ;;  %v5563_v27 = vpop.f32.mrf.mxu2 }
 0x1fd   : > { %v1872_v62 = vpop.f32.mrf.mxu0 }
 0x1fe   : > { %v1873_v25 = vadd.f32 %v1872_v62, %v6369_v34 }
 0x200   : > { %3679 = vmatmul.msk.bf16.gmra.mxu0 %vm1565_vm0, %v4001_v1  ;;  %v6365_v1 = vld [vmem:[#allocation12_spill] sm:$0xff]  ;;  %v5584_v7 = vpop.f32.mrf.mxu3 }
 0x201   : > { %6368 = vst [vmem:[#allocation43_spill] sm:$0xff] %v5584_v7 }
 0x203   : > { %v1994_v47 = vpop.f32.mrf.mxu2 }
 0x205   : > { %v1874_v35 = vpop.f32.mrf.mxu0 }
 0x20b   : > { %2836 = vmatmul.bf16.gmra.mxu2 %v3849_v50  ;;  %v5580_v50 = vpop.permute.xlu1 %1200 }
 0x20d   : > { %v1877_v32 = vpop.f32.mrf.mxu0 }
 0x210   : > { %3680 = vmatmul.msk.bf16.gmra.mxu0 %vm1565_vm0, %v4002_v57  ;;  %v6366_v57 = vld [vmem:[#allocation11_spill] sm:$0xff] }
 0x211   : > { %v1878_v10 = vadd.f32 %v1877_v32, %v6366_v57 }
 0x213   : > { %v5601_v34 = vpop.permute.xlu1 %1185 }
 0x215   : > { %v1879_v5 = vpop.f32.mrf.mxu0 }
 0x216   : > { %v1880_v55 = vadd.f32 %v1879_v5, %v6364_v41  ;;  %v2131_v5 = vmax.f32 %v1878_v10, 0.0 }
 0x21b   : > { %2841 = vmatmul.bf16.gmra.mxu2 %v3881_v51 }
 0x21d   : > { %v1882_v12 = vpop.f32.mrf.mxu0 }
 0x21e   : > { %v1883_v6 = vadd.f32 %v1882_v12, %v6363_v58  ;;  %v2132_v58 = vmax.f32 %v1880_v55, 0.0 }
 0x220   : > { %3681 = vmatmul.msk.bf16.gmra.mxu0 %vm1565_vm0, %v4003_v23  ;;  %v2133_v26 = vmax.f32 %v1883_v6, 0.0  ;;  %v6367_v23 = vld [vmem:[#allocation19_spill] sm:$0xff]  ;;  %v5592_v6 = vpop.permute.xlu2 %1190 }
 0x221   : > { %v1875_v12 = vadd.f32 %v1874_v35, %v6367_v23  ;;  %v5594_v35 = vpop.f32.mrf.mxu1  ;;  %v5610_v23 = vpop.f32.mrf.mxu3 }
 0x222   : > { %6373 = vst [vmem:[#allocation42_spill] sm:$0xff] %v5610_v23 }
 0x223   : > { %v2130_v55 = vmax.f32 %v1875_v12, 0.0  ;;  %v1997_v12 = vpop.f32.mrf.mxu2 }
 0x225   : > { %v1884_v31 = vpop.f32.mrf.mxu0 }
 0x226   : > { %v1885_v17 = vadd.f32 %v1884_v31, %v6365_v1  ;;  %v6370_v31 = vld [vmem:[#allocation10_spill] sm:$0xff]  ;;  %v2237_v1 = vpack.c.bf16 %v2132_v58, %v2131_v5  ;;  %v6374_v58 = vld [vmem:[#allocation25_spill] sm:$0xff] }
 0x227   : > { %v1870_v41 = vadd.f32 %v5495_v42, %v6370_v31  ;;  %v4094_v42 = vld [vmem:[%s6284_s3 + $0x1c4] sm:$0xf]  ;;  %v5613_v31 = vpop.permute.xlu0 %1120 }
 0x228   : > { %v2134_v51 = vmax.f32 %v1885_v17, 0.0  ;;  %v6371_v17 = vld [vmem:[#allocation16_spill] sm:$0xff]  ;;  %6375 = vst [vmem:[#allocation44_spill] sm:$0xff] %v5613_v31 }
 0x229   : > { %v1868_v62 = vadd.f32 %v5482_v63, %v6371_v17  ;;  %v3942_v63 = vld [vmem:[%s6284_s3 + $0x1e0] sm:$0xf0] }
 0x22a   : > { %v2238_v21 = vpack.c.bf16 %v2134_v51, %v2133_v26  ;;  %v6372_v26 = vld [vmem:[#allocation26_spill] sm:$0xff] }
 0x22b   : > { %2846 = vmatmul.bf16.gmra.mxu2 %v3913_v22  ;;  %v2128_v22 = vmax.f32 %v1870_v41, 0.0  ;;  %v2127_v10 = vmax.f32 %v1868_v62, 0.0  ;;  %v3945_v41 = vor.u32 %v4094_v42, %v3942_v63  ;;  %v6383_v42 = vld [vmem:[#allocation7_spill] sm:$0xff] }
 0x22c   : > { %2857 = vmatpush.bf16.msrb.mxu3 %v2238_v21  ;;  %v2129_v21 = vmax.f32 %v1873_v25, 0.0 }
 0x22d   : > { %v1887_v32 = vpop.f32.mrf.mxu0 }
 0x22e   : > { %v2236_v57 = vpack.c.bf16 %v2130_v55, %v2129_v21  ;;  %v1888_v51 = vadd.f32 %v1887_v32, %v6372_v26  ;;  %v5615_v32 = vpop.permute.xlu2 %1175  ;;  %v5617_v55 = vpop.f32.mrf.mxu1  ;;  %v6380_v26 = vld [vmem:[#allocation57_spill] sm:$0xff] }
 0x22f   : > { %6376 = vst [vmem:[#allocation39_spill] sm:$0xff] %v5615_v32  ;;  %v5621_v21 = vpop.permute.xlu1 %1110 }
 0x230   : > { %3682 = vmatmul.msk.bf16.gmra.mxu0 %vm1565_vm0, %v4004_v43  ;;  %2858 = vmatpush.bf16.msrb.mxu3 %v2237_v1  ;;  %v2235_v43 = vpack.c.bf16 %v2128_v22, %v2127_v10  ;;  %6377 = vst [vmem:[#allocation9_spill] sm:$0xff] %v5617_v55  ;;  %v2135_v1 = vmax.f32 %v1888_v51, 0.0  ;;  %v6381_v22 = vld [vmem:[#allocation8_spill] sm:$0xff]  ;;  %v1999_v55 = vpop.f32.mrf.mxu2  ;;  %v5631_v51 = vpop.permute.xlu0 %1105 }
 0x231   : > { %6379 = vst [vmem:[#allocation22_spill] sm:$0xff] %v5621_v21  ;;  %v2005_v10 = vadd.f32 %v6381_v22, %v6380_v26  ;;  %v6388_v21 = vld [vmem:[#allocation61_spill] sm:$0xff]  ;;  %v6389_v22 = vld [vmem:[#allocation15_spill] sm:$0xff] }
 0x232   : > { %6385 = vst [vmem:[#allocation12_spill] sm:$0xff] %v5631_v51  ;;  %v2000_v26 = vadd.f32 %v1999_v55, %v6388_v21  ;;  %v6390_v51 = vld [vmem:[#allocation59_spill] sm:$0xff]  ;;  %v6393_v55 = vld [vmem:[#allocation29_spill] sm:$0xff] }
 0x234   : > { %2859 = vmatpush.bf16.msrb.mxu3 %v2236_v57 }
 0x235   : > { %v1889_v25 = vpop.f32.mrf.mxu0 }
 0x236   : > { %v1890_v5 = vadd.f32 %v1889_v25, %v6374_v58  ;;  %v6382_v25 = vld [vmem:[#allocation60_spill] sm:$0xff]  ;;  %v5628_v58 = vpop.f32.mrf.mxu3 }
 0x237   : > { %v2003_v63 = vadd.f32 %v6383_v42, %v6382_v25  ;;  %6384 = vst [vmem:[#allocation23_spill] sm:$0xff] %v5628_v58  ;;  %v4043_v25 = vld [vmem:[%s6284_s3 + $0x24] sm:$0xf0] }
 0x238   : > { %v2136_v17 = vmax.f32 %v1890_v5, 0.0  ;;  %2860 = vmatpush.bf16.msrb.mxu3 %v2235_v43  ;;  %v5633_v5 = vpop.permute.xlu2 %1170  ;;  %v5635_v43 = vpop.f32.mrf.mxu1  ;;  %v6395_v58 = vld [vmem:[#allocation51_spill] sm:$0xff] }
 0x239   : > { %6386 = vst [vmem:[#allocation11_spill] sm:$0xff] %v5633_v5 }
 0x23a   : > { %v5619_v62 = vpack.c.bf16 %v2136_v17, %v2135_v1  ;;  %v6387_v1 = vld [vmem:[#allocation54_spill] sm:$0xff] }
 0x23b   : > { %2851 = vmatmul.bf16.gmra.mxu2 %v3945_v41  ;;  %v2182_v41 = vmax.f32 %v2005_v10, 0.0  ;;  %v1998_v17 = vadd.f32 %v1997_v12, %v6387_v1  ;;  %v1993_v10 = vadd.f32 %v5563_v27, %v6390_v51  ;;  %v5650_v1 = vpop.permute.xlu1 %1165  ;;  %v1990_v27 = vadd.f32 %v5547_v3, %v6395_v58  ;;  %v6399_v58 = vld [vmem:[#allocation56_spill] sm:$0xff] }
 0x23c   : > { %6378 = vst [vmem:[#allocation17_spill] sm:$0xff] %v5619_v62  ;;  %2861 = vmatpush.bf16.msrb.mxu3 %v5477_v59  ;;  %v2181_v59 = vmax.f32 %v2003_v63, 0.0  ;;  %v6391_v63 = vld [vmem:[#allocation58_spill] sm:$0xff] }
 0x23d   : > { %v1892_v57 = vpop.f32.mrf.mxu0  ;;  %v1995_v12 = vadd.f32 %v1994_v47, %v6391_v63  ;;  %6392 = vst [vmem:[#allocation19_spill] sm:$0xff] %v5650_v1  ;;  %v6396_v47 = vld [vmem:[#allocation55_spill] sm:$0xff] }
 0x23e   : > { %v1893_v23 = vadd.f32 %v1892_v57, %v6389_v22  ;;  %v2262_v57 = vpack.c.bf16 %v2182_v41, %v2181_v59  ;;  %v2180_v22 = vmax.f32 %v2000_v26, 0.0  ;;  %v5654_v31 = vpop.f32.mrf.mxu3  ;;  %v1988_v63 = vadd.f32 %v5530_v4, %v6396_v47  ;;  %v5662_v59 = vpop.permute.xlu0 %1180 }
 0x23f   : > { %6394 = vst [vmem:[#allocation20_spill] sm:$0xff] %v5654_v31  ;;  %v2178_v41 = vmax.f32 %v1995_v12, 0.0  ;;  %v1985_v4 = vadd.f32 %v5511_v48, %v6399_v58 }
 0x240   : > { %2862 = vmatpush.bf16.msrb.mxu3 %v5455_v52  ;;  %v3724_v52 = vld [vmem:[%s6284_s3 + $0x8] sm:$0xf]  ;;  %v2137_v7 = vmax.f32 %v1893_v23, 0.0  ;;  %v5664_v26 = vpop.f32.mrf.mxu1 }
 0x241   : > { %v3725_v5 = vor.u32 %v4043_v25, %v3724_v52  ;;  %6397 = vst [vmem:[#allocation10_spill] sm:$0xff] %v5664_v26  ;;  %v6398_v25 = vld [vmem:[#allocation48_spill] sm:$0xff] }
 0x244   : > { %2863 = vmatpush.bf16.msrb.mxu3 %v5422_v36  ;;  %v2179_v36 = vmax.f32 %v1998_v17, 0.0  ;;  %v2362_v17 = vpop.permute.xlu2 %2361 }
 0x245   : > { %v1894_v42 = vpop.f32.mrf.mxu0 }
 0x246   : > { %v1895_v21 = vadd.f32 %v1894_v42, %v6393_v55  ;;  %v2177_v42 = vmax.f32 %v1993_v10, 0.0  ;;  %v2261_v23 = vpack.c.bf16 %v2180_v22, %v2179_v36  ;;  %v2175_v10 = vmax.f32 %v1988_v63, 0.0  ;;  %v5673_v55 = vpop.permute.xlu1 %1160  ;;  %v6403_v36 = vld [vmem:[#allocation53_spill] sm:$0xff]  ;;  %v5679_v47 = vpop.f32.mrf.mxu3  ;;  %v3756_v63 = vld [vmem:[%s6284_s3 + $0x48] sm:$0xf] }
 0x247   : > { %6401 = vst [vmem:[#allocation26_spill] sm:$0xff] %v5673_v55  ;;  %v1978_v22 = vadd.f32 %v5474_v53, %v6403_v36 }
 0x248   : > { %v2138_v37 = vmax.f32 %v1895_v21, 0.0  ;;  %2864 = vmatpush.bf16.msrb.mxu3 %v5370_v18  ;;  %v2769_v18 = vadd.f32 %v5594_v35, %v2362_v17  ;;  %v6406_v17 = vld [vmem:[#allocation47_spill] sm:$0xff] }
 0x249   : > { %v1975_v53 = vadd.f32 %v5459_v61, %v6406_v17 }
 0x24a   : > { %v5658_v51 = vpack.c.bf16 %v2138_v37, %v2137_v7  ;;  %v1983_v7 = vadd.f32 %v5499_v54, %v6398_v25  ;;  %v2176_v37 = vmax.f32 %v1990_v27, 0.0  ;;  %v2174_v54 = vmax.f32 %v1985_v4, 0.0 }
 0x24b   : > { %2865 = vmatmul.bf16.vlgmr.msrb.gmra.mxu3 %v3725_v5  ;;  %v2260_v5 = vpack.c.bf16 %v2178_v41, %v2177_v42  ;;  %v4051_v42 = vld [vmem:[%s6284_s3 + $0x64] sm:$0xf0]  ;;  %v5688_v41 = vpop.permute.xlu0 %1155  ;;  %v2171_v4 = vmax.f32 %v1978_v22, 0.0 }
 0x24c   : > { %3004 = vmatpush.bf16.msra.mxu3 %v2262_v57  ;;  %v2173_v21 = vmax.f32 %v1983_v7, 0.0  ;;  %v6402_v57 = vld [vmem:[#allocation52_spill] sm:$0xff]  ;;  %v2259_v27 = vpack.c.bf16 %v2176_v37, %v2175_v10  ;;  %6405 = vst [vmem:[#allocation25_spill] sm:$0xff] %v5688_v41  ;;  %v2778_v7 = vpop.f32.mrf.mxu1 }
 0x24d   : > { %v1897_v52 = vpop.f32.mrf.mxu0  ;;  %v1980_v35 = vadd.f32 %v5486_v15, %v6402_v57  ;;  %v6436_v41 = vld [vmem:[#allocation24_spill] sm:$0xff] }
 0x24e   : > { %v2817_v3 = vpop.f32.mrf.mxu2  ;;  %v2258_v10 = vpack.c.bf16 %v2174_v54, %v2173_v21 }
 0x24f   : > { %v5671_v12 = vadd.f32 %v2817_v3, %v2769_v18  ;;  %v6407_v18 = vld [vmem:[#allocation49_spill] sm:$0xff]  ;;  %v2172_v58 = vmax.f32 %v1980_v35, 0.0 }
 0x250   : > { %3005 = vmatpush.bf16.msra.mxu3 %v2261_v23  ;;  %v6404_v23 = vld [vmem:[#allocation28_spill] sm:$0xff]  ;;  %v1973_v25 = vadd.f32 %v5439_v33, %v6407_v18  ;;  %v6411_v18 = vld [vmem:[#allocation50_spill] sm:$0xff] }
 0x251   : > { %6400 = vst [vmem:[#allocation16_spill] sm:$0xff] %v5671_v12  ;;  %v1898_v48 = vadd.f32 %v1897_v52, %v6404_v23  ;;  %v6408_v52 = vld [vmem:[#allocation18_spill] sm:$0xff]  ;;  %v2170_v23 = vmax.f32 %v1975_v53, 0.0  ;;  %v2257_v17 = vpack.c.bf16 %v2172_v58, %v2171_v4  ;;  %v6410_v12 = vld [vmem:[#allocation45_spill] sm:$0xff]  ;;  %v6416_v4 = vld [vmem:[#allocation32_spill] sm:$0xff] }
 0x252   : > { %v2169_v61 = vmax.f32 %v1973_v25, 0.0  ;;  %v1968_v33 = vadd.f32 %v5551_v60, %v6410_v12 }
 0x253   : > { %v2139_v57 = vmax.f32 %v1898_v48, 0.0  ;;  %v5704_v48 = vpop.f32.mrf.mxu3  ;;  %v5708_v25 = vpop.permute.xlu0 %2366 }
 0x254   : > { %3006 = vmatpush.bf16.msra.mxu3 %v2260_v5  ;;  %v3757_v5 = vor.u32 %v4051_v42, %v3756_v63  ;;  %v2256_v54 = vpack.c.bf16 %v2170_v23, %v2169_v61  ;;  %v2167_v63 = vmax.f32 %v1968_v33, 0.0  ;;  %6413 = vst [vmem:[#allocation60_spill] sm:$0xff] %v5708_v25 }
 0x255   : > { %v1899_v15 = vpop.f32.mrf.mxu0 }
 0x256   : > { %v1900_v37 = vadd.f32 %v1899_v15, %v6408_v52  ;;  %v5695_v3 = vpop.f32.mrf.mxu2  ;;  %v1970_v15 = vadd.f32 %v5567_v0, %v6411_v18  ;;  %v5710_v52 = vpop.f32.mrf.mxu1  ;;  %v6415_v0 = vld [vmem:[#allocation33_spill] sm:$0xff] }
 0x257   : > { %6409 = vst [vmem:[#allocation57_spill] sm:$0xff] %v5695_v3 }
 0x258   : > { %3007 = vmatpush.bf16.msra.mxu3 %v2259_v27  ;;  %v2140_v36 = vmax.f32 %v1900_v37, 0.0  ;;  %v2372_v27 = vpop.permute.xlu1 %2371  ;;  %v2168_v42 = vmax.f32 %v1970_v15, 0.0  ;;  %6414 = vst [vmem:[#allocation7_spill] sm:$0xff] %v5710_v52  ;;  %v4059_v37 = vld [vmem:[%s6284_s3 + $0xa4] sm:$0xf0] }
 0x259   : > { %v2774_v35 = vadd.f32 %v5635_v43, %v2372_v27  ;;  %v3788_v43 = vld [vmem:[%s6284_s3 + $0x88] sm:$0xf] }
 0x25a   : > { %v5697_v26 = vpack.c.bf16 %v2140_v36, %v2139_v57  ;;  %v2255_v60 = vpack.c.bf16 %v2168_v42, %v2167_v63  ;;  %v3789_v57 = vor.u32 %v4059_v37, %v3788_v43  ;;  %v3820_v42 = vld [vmem:[%s6284_s3 + $0xc8] sm:$0xf] }
 0x25b   : > { %2870 = vmatmul.bf16.gmra.mxu3 %v3757_v5  ;;  %v5722_v27 = vpop.f32.mrf.mxu3  ;;  %v2382_v61 = vpop.permute.xlu0 %2381 }
 0x25c   : > { %3008 = vmatpush.bf16.msra.mxu3 %v2258_v10  ;;  %v2779_v18 = vadd.f32 %v2778_v7, %v2382_v61  ;;  %v3852_v61 = vld [vmem:[%s6284_s3 + $0x108] sm:$0xf] }
 0x25d   : > { %v1902_v21 = vpop.f32.mrf.mxu0 }
 0x25e   : > { %v2822_v22 = vpop.f32.mrf.mxu2  ;;  %v1903_v12 = vadd.f32 %v1902_v21, %v6415_v0 }
 0x25f   : > { %v5706_v53 = vadd.f32 %v2822_v22, %v2774_v35  ;;  %v5730_v22 = vpop.permute.xlu2 %2376 }
 0x260   : > { %3009 = vmatpush.bf16.msra.mxu3 %v2257_v17  ;;  %v2141_v36 = vmax.f32 %v1903_v12, 0.0  ;;  %v2783_v17 = vpop.f32.mrf.mxu1  ;;  %6419 = vst [vmem:[#allocation15_spill] sm:$0xff] %v5730_v22 }
 0x261   : > { %6412 = vst [vmem:[#allocation8_spill] sm:$0xff] %v5706_v53 }
 0x264   : > { %3010 = vmatpush.bf16.msra.mxu3 %v2256_v54  ;;  %v5732_v54 = vpop.f32.mrf.mxu3 }
 0x265   : > { %v1904_v58 = vpop.f32.mrf.mxu0 }
 0x266   : > { %v1905_v10 = vadd.f32 %v1904_v58, %v6416_v4  ;;  %v5720_v5 = vpop.f32.mrf.mxu2 }
 0x267   : > { %6417 = vst [vmem:[#allocation54_spill] sm:$0xff] %v5720_v5  ;;  %v2392_v43 = vpop.permute.xlu2 %2391 }
 0x268   : > { %3011 = vmatpush.bf16.msra.mxu3 %v2255_v60  ;;  %v2142_v23 = vmax.f32 %v1905_v10, 0.0  ;;  %v5734_v63 = vpop.f32.mrf.mxu1  ;;  %v4067_v60 = vld [vmem:[%s6284_s3 + $0xe4] sm:$0xf0]  ;;  %v2784_v58 = vadd.f32 %v2783_v17, %v2392_v43 }
 0x269   : > { %6420 = vst [vmem:[#allocation59_spill] sm:$0xff] %v5734_v63  ;;  %v3821_v12 = vor.u32 %v4067_v60, %v3820_v42 }
 0x26a   : > { %v5724_v33 = vpack.c.bf16 %v2142_v23, %v2141_v36  ;;  %v5750_v23 = vpop.permute.xlu1 %2386 }
 0x26b   : > { %2875 = vmatmul.bf16.gmra.mxu3 %v3789_v57  ;;  %6423 = vst [vmem:[#allocation51_spill] sm:$0xff] %v5750_v23  ;;  %v5768_v23 = vpop.permute.xlu0 %2396 }
 0x26c   : > { %v5746_v37 = vpop.f32.mrf.mxu3  ;;  %6427 = vst [vmem:[#allocation52_spill] sm:$0xff] %v5768_v23 }
 0x26d   : > { %v5726_v15 = vpop.f32.mrf.mxu0 }
 0x26e   : > { %v2827_v35 = vpop.f32.mrf.mxu2 }
 0x26f   : > { %v5728_v21 = vadd.f32 %v2827_v35, %v2779_v18  ;;  %v4075_v18 = vld [vmem:[%s6284_s3 + $0x124] sm:$0xf0]  ;;  %v5782_v25 = vpop.permute.xlu2 %2406 }
 0x270   : > { %v2788_v10 = vpop.f32.mrf.mxu1  ;;  %v3853_v17 = vor.u32 %v4075_v18, %v3852_v61  ;;  %v4083_v61 = vld [vmem:[%s6284_s3 + $0x164] sm:$0xf0]  ;;  %6431 = vst [vmem:[#allocation49_spill] sm:$0xff] %v5782_v25 }
 0x271   : > { %6418 = vst [vmem:[#allocation61_spill] sm:$0xff] %v5728_v21  ;;  %v3916_v21 = vld [vmem:[%s6284_s3 + $0x188] sm:$0xf] }
 0x272   : > { %v2402_v43 = vpop.permute.xlu1 %2401 }
 0x274   : > { %v5760_v60 = vpop.f32.mrf.mxu3 }
 0x275   : > { %v5742_v7 = vpop.f32.mrf.mxu0 }
 0x276   : > { %v5744_v0 = vpop.f32.mrf.mxu2 }
 0x277   : > { %6421 = vst [vmem:[#allocation58_spill] sm:$0xff] %v5744_v0  ;;  %v2422_v38 = vpop.permute.xlu2 %2421 }
 0x27b   : > { %2880 = vmatmul.bf16.gmra.mxu3 %v3821_v12  ;;  %v5762_v12 = vpop.f32.mrf.mxu1 }
 0x27c   : > { %6425 = vst [vmem:[#allocation48_spill] sm:$0xff] %v5762_v12  ;;  %v5766_v52 = vpop.f32.mrf.mxu3 }
 0x27d   : > { %v1912_v4 = vpop.f32.mrf.mxu0 }
 0x27e   : > { %v2832_v57 = vpop.f32.mrf.mxu2  ;;  %v1913_v62 = vadd.f32 %v1912_v4, %v6437_v49  ;;  %v5806_v49 = vpop.permute.xlu1 %2416 }
 0x27f   : > { %v5748_v36 = vadd.f32 %v2832_v57, %v2784_v58  ;;  %v2789_v58 = vadd.f32 %v2788_v10, %v2402_v43 }
 0x281   : > { %6422 = vst [vmem:[#allocation29_spill] sm:$0xff] %v5748_v36 }
 0x283   : > { %v2793_v5 = vpop.f32.mrf.mxu1 }
 0x284   : > { %v2079_v43 = vpop.f32.mrf.mxu3 }
 0x285   : > { %v1914_v35 = vpop.f32.mrf.mxu0 }
 0x286   : > { %v5758_v42 = vpop.f32.mrf.mxu2  ;;  %v1915_v55 = vadd.f32 %v1914_v35, %v6436_v41  ;;  %v2145_v35 = vmax.f32 %v1913_v62, 0.0  ;;  %v4099_v62 = vld [vmem:[%s6284_s3 + $0x1e4] sm:$0xf0] }
 0x287   : > { %6424 = vst [vmem:[#allocation55_spill] sm:$0xff] %v5758_v42  ;;  %v3884_v42 = vld [vmem:[%s6284_s3 + $0x148] sm:$0xf] }
 0x288   : > { %v3885_v10 = vor.u32 %v4083_v61, %v3884_v42  ;;  %v4091_v42 = vld [vmem:[%s6284_s3 + $0x1a4] sm:$0xf0] }
 0x289   : > { %v3917_v25 = vor.u32 %v4091_v42, %v3916_v21  ;;  %v2146_v21 = vmax.f32 %v1915_v55, 0.0 }
 0x28b   : > { %2885 = vmatmul.bf16.gmra.mxu3 %v3853_v17 }
 0x28c   : > { %v2082_v61 = vpop.f32.mrf.mxu3 }
 0x28d   : > { %v1917_v57 = vpop.f32.mrf.mxu0  ;;  %v2083_v4 = vadd.f32 %v2082_v61, %v5519_v16 }
 0x28e   : > { %v2837_v63 = vpop.f32.mrf.mxu2 }
 0x28f   : > { %v5764_v0 = vadd.f32 %v2837_v63, %v2789_v58  ;;  %v2412_v63 = vpop.permute.xlu0 %2411  ;;  %v5778_v58 = vpop.f32.mrf.mxu1 }
 0x290   : > { %6429 = vst [vmem:[#allocation28_spill] sm:$0xff] %v5778_v58  ;;  %v2794_v12 = vadd.f32 %v2793_v5, %v2412_v63  ;;  %v6433_v5 = vld [vmem:[#allocation37_spill] sm:$0xff] }
 0x291   : > { %6426 = vst [vmem:[#allocation56_spill] sm:$0xff] %v5764_v0  ;;  %v6432_v0 = vld [vmem:[#allocation27_spill] sm:$0xff] }
 0x295   : > { %v1919_v18 = vpop.f32.mrf.mxu0 }
 0x296   : > { %v5776_v17 = vpop.f32.mrf.mxu2  ;;  %v1920_v63 = vadd.f32 %v1919_v18, %v6433_v5 }
 0x297   : > { %6428 = vst [vmem:[#allocation53_spill] sm:$0xff] %v5776_v17  ;;  %v2798_v58 = vpop.f32.mrf.mxu1  ;;  %v6434_v17 = vld [vmem:[#allocation41_spill] sm:$0xff] }
 0x298   : > { %v2148_v1 = vmax.f32 %v1920_v63, 0.0  ;;  %v2799_v18 = vadd.f32 %v2798_v58, %v2422_v38  ;;  %v3948_v58 = vld [vmem:[%s6284_s3 + $0x1c8] sm:$0xf]  ;;  %v2080_v63 = vadd.f32 %v2079_v43, %v5521_v11  ;;  %v4044_v11 = vld [vmem:[%s6284_s3 + $0x2c] sm:$0xf0]  ;;  %v2073_v43 = vadd.f32 %v5746_v37, %v5534_v45 }
 0x299   : > { %v2045_v45 = vadd.f32 %v5528_v28, %v5532_v14  ;;  %v2065_v28 = vadd.f32 %v5704_v48, %v5592_v6  ;;  %v2040_v14 = vadd.f32 %v5497_v39, %v5537_v46  ;;  %v3726_v6 = vld [vmem:[%s6284_s3 + $0x28] sm:$0xf0]  ;;  %v3734_v39 = vld [vmem:[%s6284_s3 + $0x30] sm:$0xf0]  ;;  %v2035_v46 = vadd.f32 %v5472_v20, %v5553_v8  ;;  %v3764_v20 = vld [vmem:[%s6284_s3 + $0x50] sm:$0xf] }
 0x29b   : > { %2890 = vmatmul.bf16.gmra.mxu3 %v3885_v10  ;;  %v2194_v8 = vmax.f32 %v2035_v46, 0.0 }
 0x29d   : > { %v1922_v23 = vpop.f32.mrf.mxu0 }
 0x29e   : > { %v2842_v22 = vpop.f32.mrf.mxu2  ;;  %v1923_v36 = vadd.f32 %v1922_v23, %v6432_v0 }
 0x29f   : > { %v5780_v3 = vadd.f32 %v2842_v22, %v2794_v12  ;;  %v5802_v41 = vpop.f32.mrf.mxu1 }
 0x2a0   : > { %v2149_v23 = vmax.f32 %v1923_v36, 0.0 }
 0x2a1   : > { %6430 = vst [vmem:[#allocation47_spill] sm:$0xff] %v5780_v3  ;;  %v6435_v3 = vld [vmem:[#allocation38_spill] sm:$0xff] }
 0x2a2   : > { %v1918_v0 = vadd.f32 %v1917_v57, %v6435_v3  ;;  %v2084_v57 = vpop.f32.mrf.mxu3 }
 0x2a3   : > { %v2085_v55 = vadd.f32 %v2084_v57, %v5506_v13  ;;  %v2078_v13 = vadd.f32 %v5766_v52, %v5523_v2 }
 0x2a4   : > { %v2147_v31 = vmax.f32 %v1918_v0, 0.0  ;;  %v6441_v0 = vld [vmem:[#allocation31_spill] sm:$0xff] }
 0x2a5   : > { %v1924_v10 = vpop.f32.mrf.mxu0  ;;  %v2211_v52 = vmax.f32 %v2078_v13, 0.0 }
 0x2a6   : > { %v1925_v22 = vadd.f32 %v1924_v10, %v6434_v17  ;;  %v5793_v12 = vpop.f32.mrf.mxu2  ;;  %v6438_v17 = vld [vmem:[#allocation36_spill] sm:$0xff]  ;;  %v2245_v42 = vpack.c.bf16 %v2148_v1, %v2147_v31 }
 0x2a7   : > { %v1910_v10 = vadd.f32 %v5742_v7, %v6438_v17  ;;  %v6440_v1 = vld [vmem:[#allocation40_spill] sm:$0xff] }
 0x2a8   : > { %v2150_v53 = vmax.f32 %v1925_v22, 0.0 }
 0x2a9   : > { %v2144_v38 = vmax.f32 %v1910_v10, 0.0 }
 0x2aa   : > { %v2246_v32 = vpack.c.bf16 %v2150_v53, %v2149_v23  ;;  %v6439_v53 = vld [vmem:[#allocation21_spill] sm:$0xff]  ;;  %v2213_v23 = vmax.f32 %v2083_v4, 0.0  ;;  %v2209_v4 = vmax.f32 %v2073_v43, 0.0  ;;  %v6451_v43 = vld [vmem:[#allocation43_spill] sm:$0xff] }
 0x2ab   : > { %2895 = vmatmul.bf16.gmra.mxu3 %v3917_v25  ;;  %v1908_v25 = vadd.f32 %v5726_v15, %v6439_v53  ;;  %v2075_v53 = vadd.f32 %v5760_v60, %v5565_v44  ;;  %v2068_v44 = vadd.f32 %v5722_v27, %v5590_v9 }
 0x2ac   : > { %2906 = vmatpush.bf16.msra.mxu1 %v2246_v32  ;;  %v2244_v32 = vpack.c.bf16 %v2146_v21, %v2145_v35  ;;  %v3732_v21 = vld [vmem:[%s6284_s3 + $0x10] sm:$0xf]  ;;  %v2432_v35 = vpop.permute.xlu1 %2431 }
 0x2ad   : > { %v1927_v5 = vpop.f32.mrf.mxu0  ;;  %v2143_v31 = vmax.f32 %v1908_v25, 0.0  ;;  %v3733_v25 = vor.u32 %v4044_v11, %v3732_v21  ;;  %v2207_v27 = vmax.f32 %v2068_v44, 0.0  ;;  %v6450_v11 = vld [vmem:[#allocation19_spill] sm:$0xff]  ;;  %v6454_v44 = vld [vmem:[#allocation22_spill] sm:$0xff] }
 0x2ae   : > { %v2847_v3 = vpop.f32.mrf.mxu2  ;;  %v1928_v7 = vadd.f32 %v1927_v5, %v6440_v1  ;;  %v3949_v5 = vor.u32 %v4099_v62, %v3948_v58  ;;  %v2063_v1 = vadd.f32 %v5679_v47, %v5601_v34  ;;  %v2033_v34 = vadd.f32 %v5457_v19, %v5558_v40  ;;  %v6442_v62 = vld [vmem:[#allocation20_spill] sm:$0xff]  ;;  %v6444_v40 = vld [vmem:[#allocation13_spill] sm:$0xff] }
 0x2af   : > { %v5800_v36 = vadd.f32 %v2847_v3, %v2799_v18  ;;  %v2243_v22 = vpack.c.bf16 %v2144_v38, %v2143_v31  ;;  %v2214_v18 = vmax.f32 %v2085_v55, 0.0  ;;  %v2803_v3 = vpop.f32.mrf.mxu1  ;;  %v2043_v38 = vadd.f32 %v5509_v56, %v5501_v30  ;;  %v4052_v19 = vld [vmem:[%s6284_s3 + $0x6c] sm:$0xf0] }
 0x2b0   : > { %2907 = vmatpush.bf16.msra.mxu1 %v2245_v42  ;;  %v2151_v17 = vmax.f32 %v1928_v7, 0.0  ;;  %v2212_v42 = vmax.f32 %v2080_v63, 0.0  ;;  %v2804_v37 = vadd.f32 %v2803_v3, %v2432_v35  ;;  %v2210_v31 = vmax.f32 %v2075_v53, 0.0 }
 0x2b1   : > { %v2278_v57 = vpack.c.bf16 %v2214_v18, %v2213_v23  ;;  %v2197_v30 = vmax.f32 %v2043_v38, 0.0  ;;  %v2198_v56 = vmax.f32 %v2045_v45, 0.0  ;;  %v2196_v47 = vmax.f32 %v2040_v14, 0.0  ;;  %v6446_v23 = vld [vmem:[#allocation39_spill] sm:$0xff]  ;;  %v6453_v45 = vld [vmem:[#allocation42_spill] sm:$0xff] }
 0x2b2   : > { %v2277_v55 = vpack.c.bf16 %v2212_v42, %v2211_v52  ;;  %v2205_v58 = vmax.f32 %v2063_v1, 0.0  ;;  %v6447_v18 = vld [vmem:[#allocation23_spill] sm:$0xff]  ;;  %v2053_v42 = vadd.f32 %v6451_v43, %v6450_v11  ;;  %v6461_v1 = vld [vmem:[#allocation46_spill] sm:$0xff]  ;;  %v3798_v11 = vld [vmem:[%s6284_s3 + $0xb0] sm:$0xf0] }
 0x2b3   : > { %v6452_v38 = vld [vmem:[#allocation11_spill] sm:$0xff]  ;;  %v6466_v43 = vld [vmem:[#allocation62_spill] sm:$0xff] }
 0x2b4   : > { %2908 = vmatpush.bf16.msra.mxu1 %v2244_v32  ;;  %v2070_v32 = vadd.f32 %v5732_v54, %v5580_v50  ;;  %v2038_v50 = vadd.f32 %v5484_v29, %v5549_v24  ;;  %v2276_v54 = vpack.c.bf16 %v2210_v31, %v2209_v4  ;;  %v4040_v29 = vld [vmem:[%s6284_s3 + $0x14] sm:$0xf]  ;;  %v2270_v24 = vpack.c.bf16 %v2198_v56, %v2197_v30  ;;  %v6457_v31 = vld [vmem:[#allocation30_spill] sm:$0xff] }
 0x2b5   : > { %v1929_v15 = vpop.f32.mrf.mxu0  ;;  %v2201_v56 = vmax.f32 %v2053_v42, 0.0 }
 0x2b6   : > { %v1930_v16 = vadd.f32 %v1929_v15, %v6441_v0  ;;  %v5819_v61 = vpop.f32.mrf.mxu2  ;;  %v2208_v9 = vmax.f32 %v2070_v32, 0.0  ;;  %v2195_v48 = vmax.f32 %v2038_v50, 0.0  ;;  %v2060_v15 = vadd.f32 %v6442_v62, %v5662_v59  ;;  %v6443_v0 = vld [vmem:[#allocation17_spill] sm:$0xff]  ;;  %v6458_v50 = vld [vmem:[#allocation26_spill] sm:$0xff] }
 0x2b7   : > { %v2193_v59 = vmax.f32 %v2033_v34, 0.0  ;;  %v4048_v62 = vld [vmem:[%s6284_s3 + $0x54] sm:$0xf] }
 0x2b8   : > { %v2152_v10 = vmax.f32 %v1930_v16, 0.0  ;;  %2909 = vmatpush.bf16.msra.mxu1 %v2243_v22  ;;  %v2275_v7 = vpack.c.bf16 %v2208_v9, %v2207_v27  ;;  %v3737_v22 = vor.u32 %v4040_v29, %v3734_v39  ;;  %v6445_v16 = vld [vmem:[#allocation65_spill] sm:$0xff]  ;;  %v2269_v3 = vpack.c.bf16 %v2196_v47, %v2195_v48  ;;  %v6459_v9 = vld [vmem:[#allocation14_spill] sm:$0xff] }
 0x2b9   : > { %v2028_v13 = vadd.f32 %v6445_v16, %v6444_v40  ;;  %v2204_v52 = vmax.f32 %v2060_v15, 0.0  ;;  %v2268_v35 = vpack.c.bf16 %v2194_v8, %v2193_v59  ;;  %v2050_v27 = vadd.f32 %v6459_v9, %v6458_v50  ;;  %v3766_v15 = vld [vmem:[%s6284_s3 + $0x70] sm:$0xf0]  ;;  %v3796_v8 = vld [vmem:[%s6284_s3 + $0x90] sm:$0xf] }
 0x2ba   : > { %v2247_v2 = vpack.c.bf16 %v2152_v10, %v2151_v17  ;;  %v6448_v17 = vld [vmem:[#allocation44_spill] sm:$0xff]  ;;  %v6449_v10 = vld [vmem:[#allocation66_spill] sm:$0xff] }
 0x2bb   : > { %2900 = vmatmul.bf16.gmra.mxu3 %v3949_v5  ;;  %v2058_v5 = vadd.f32 %v6447_v18, %v6446_v23  ;;  %v2030_v21 = vadd.f32 %v6449_v10, %v6448_v17  ;;  %v2191_v53 = vmax.f32 %v2028_v13, 0.0  ;;  %v2200_v47 = vmax.f32 %v2050_v27, 0.0  ;;  %v4060_v40 = vld [vmem:[%s6284_s3 + $0xac] sm:$0xf0]  ;;  %v6463_v13 = vld [vmem:[#allocation63_spill] sm:$0xff] }
 0x2bc   : > { %2910 = vmatpush.bf16.msra.mxu1 %v5724_v33  ;;  %2962 = vmatpush.bf16.msra.mxu2 %v2247_v2  ;;  %v3797_v16 = vor.u32 %v4060_v40, %v3796_v8  ;;  %v6464_v18 = vld [vmem:[#allocation8_spill] sm:$0xff] }
 0x2bd   : > { %v2192_v32 = vmax.f32 %v2030_v21, 0.0  ;;  %v6465_v59 = vld [vmem:[#allocation64_spill] sm:$0xff]  ;;  %v4056_v21 = vld [vmem:[%s6284_s3 + $0x94] sm:$0xf] }
 0x2be   : > { %v2852_v60 = vpop.f32.mrf.mxu2  ;;  %v4055_v17 = vld [vmem:[%s6284_s3 + $0x8c] sm:$0xf]  ;;  %v4092_v8 = vld [vmem:[%s6284_s3 + $0x1ac] sm:$0xf0] }
 0x2bf   : > { %v5842_v33 = vadd.f32 %v2852_v60, %v2804_v37  ;;  %2963 = vmatmul.bf16.vlgmr.msra.gmra.mxu2 %v3733_v25  ;;  %v2203_v25 = vmax.f32 %v2058_v5, 0.0  ;;  %v2055_v37 = vadd.f32 %v6453_v45, %v6452_v38  ;;  %v6455_v60 = vld [vmem:[#allocation34_spill] sm:$0xff]  ;;  %v2267_v46 = vpack.c.bf16 %v2192_v32, %v2191_v53  ;;  %v3790_v10 = vld [vmem:[%s6284_s3 + $0xa8] sm:$0xf0]  ;;  %v4064_v32 = vld [vmem:[%s6284_s3 + $0xd4] sm:$0xf] }
 0x2c0   : > { %3102 = vmatpush.bf16.msrb.mxu2 %v2278_v57  ;;  %2911 = vmatpush.bf16.msra.mxu1 %v5697_v26  ;;  %v4039_v26 = vld [vmem:[%s6284_s3 + $0xc] sm:$0xf]  ;;  %v3765_v57 = vor.u32 %v4052_v19, %v3764_v20  ;;  %v2025_v4 = vadd.f32 %v6455_v60, %v6454_v44  ;;  %v3769_v19 = vor.u32 %v4048_v62, %v3766_v15  ;;  %v3830_v44 = vld [vmem:[%s6284_s3 + $0xf0] sm:$0xf0] }
 0x2c1   : > { %v3729_v63 = vor.u32 %v4039_v26, %v3726_v6  ;;  %v2273_v14 = vpack.c.bf16 %v2204_v52, %v2203_v25  ;;  %v6462_v6 = vld [vmem:[#allocation16_spill] sm:$0xff]  ;;  %v2202_v39 = vmax.f32 %v2055_v37, 0.0  ;;  %v4080_v62 = vld [vmem:[%s6284_s3 + $0x154] sm:$0xf] }
 0x2c2   : > { %v3828_v52 = vld [vmem:[%s6284_s3 + $0xd0] sm:$0xf]  ;;  %v4063_v45 = vld [vmem:[%s6284_s3 + $0xcc] sm:$0xf]  ;;  %v3894_v15 = vld [vmem:[%s6284_s3 + $0x170] sm:$0xf0] }
 0x2c3   : > { %v3822_v37 = vld [vmem:[%s6284_s3 + $0xe8] sm:$0xf0] }
 0x2c4   : > { %3103 = vmatpush.bf16.msrb.mxu2 %v2277_v55  ;;  %2912 = vmatpush.bf16.msra.mxu1 %v5658_v51  ;;  %v2206_v51 = vmax.f32 %v2065_v28, 0.0  ;;  %v6456_v55 = vld [vmem:[#allocation12_spill] sm:$0xff] }
 0x2c5   : > { %v2023_v30 = vadd.f32 %v6457_v31, %v6456_v55  ;;  %v3833_v55 = vor.u32 %v4064_v32, %v3830_v44  ;;  %v3860_v31 = vld [vmem:[%s6284_s3 + $0x110] sm:$0xf]  ;;  %v4071_v9 = vld [vmem:[%s6284_s3 + $0x10c] sm:$0xf] }
 0x2c6   : > { %v2274_v2 = vpack.c.bf16 %v2206_v51, %v2205_v58  ;;  %v2272_v51 = vpack.c.bf16 %v2202_v39, %v2201_v56  ;;  %v3758_v58 = vld [vmem:[%s6284_s3 + $0x68] sm:$0xf0] }
 0x2c7   : > { %v2189_v34 = vmax.f32 %v2023_v30, 0.0  ;;  %v4076_v30 = vld [vmem:[%s6284_s3 + $0x12c] sm:$0xf0]  ;;  %v3854_v27 = vld [vmem:[%s6284_s3 + $0x128] sm:$0xf0] }
 0x2c8   : > { %3104 = vmatpush.bf16.msrb.mxu2 %v2276_v54  ;;  %2913 = vmatpush.bf16.msra.mxu1 %v6443_v0  ;;  %v6460_v54 = vld [vmem:[#allocation25_spill] sm:$0xff]  ;;  %v3861_v56 = vor.u32 %v4076_v30, %v3860_v31  ;;  %v6061_v31 = vpop.f32.mrf.mxu2 }
 0x2c9   : > { %v2048_v26 = vadd.f32 %v6461_v1, %v6460_v54  ;;  %v4072_v54 = vld [vmem:[%s6284_s3 + $0x114] sm:$0xf] }
 0x2ca   : > { %v3862_v1 = vld [vmem:[%s6284_s3 + $0x130] sm:$0xf0] }
 0x2cb   : > { %2914 = vmatmul.bf16.vlgmr.msra.gmra.mxu1 %v3729_v63  ;;  %3012 = vmatmul.bf16.vlgmr.msra.gmra.mxu3 %v3737_v22  ;;  %v2199_v48 = vmax.f32 %v2048_v26, 0.0  ;;  %v3865_v39 = vor.u32 %v4072_v54, %v3862_v1  ;;  %v4045_v54 = vld [vmem:[%s6284_s3 + $0x34] sm:$0xf0] }
 0x2cc   : > { %3053 = vmatpush.bf16.msrb.mxu1 %v2270_v24  ;;  %3105 = vmatpush.bf16.msrb.mxu2 %v2275_v7  ;;  %v2190_v24 = vmax.f32 %v2025_v4, 0.0  ;;  %v4047_v7 = vld [vmem:[%s6284_s3 + $0x4c] sm:$0xf]  ;;  %v3825_v4 = vor.u32 %v4063_v45, %v3822_v37  ;;  %v4096_v45 = vld [vmem:[%s6284_s3 + $0x1d4] sm:$0xf] }
 0x2cd   : > { %v2271_v0 = vpack.c.bf16 %v2200_v47, %v2199_v48  ;;  %v3761_v20 = vor.u32 %v4047_v7, %v3758_v58  ;;  %v6469_v47 = vld [vmem:[#allocation56_spill] sm:$0xff]  ;;  %v3958_v37 = vld [vmem:[%s6284_s3 + $0x1f0] sm:$0xf0] }
 0x2ce   : > { %v2866_v28 = vpop.f32.mrf.mxu3  ;;  %v2266_v22 = vpack.c.bf16 %v2190_v24, %v2189_v34  ;;  %v4084_v24 = vld [vmem:[%s6284_s3 + $0x16c] sm:$0xf0]  ;;  %v4079_v7 = vld [vmem:[%s6284_s3 + $0x14c] sm:$0xf]  ;;  %v3961_v44 = vor.u32 %v4096_v45, %v3958_v37 }
 0x2cf   : > { %v5898_v29 = vadd.f32 %v2866_v28, %v6462_v6  ;;  %2968 = vmatmul.bf16.gmra.mxu2 %v3765_v57  ;;  %v4068_v57 = vld [vmem:[%s6284_s3 + $0xec] sm:$0xf0]  ;;  %v3857_v6 = vor.u32 %v4071_v9, %v3854_v27  ;;  %v3886_v58 = vld [vmem:[%s6284_s3 + $0x168] sm:$0xf0]  ;;  %v3740_v27 = vld [vmem:[%s6284_s3 + $0x18] sm:$0xf] }
 0x2d0   : > { %3054 = vmatpush.bf16.msrb.mxu1 %v2269_v3  ;;  %3106 = vmatpush.bf16.msrb.mxu2 %v2274_v2  ;;  %v3793_v3 = vor.u32 %v4055_v17, %v3790_v10  ;;  %v3801_v2 = vor.u32 %v4056_v21, %v3798_v11  ;;  %v3829_v53 = vor.u32 %v4068_v57, %v3828_v52  ;;  %v4088_v17 = vld [vmem:[%s6284_s3 + $0x194] sm:$0xf] }
 0x2d1   : > { %v3926_v10 = vld [vmem:[%s6284_s3 + $0x1b0] sm:$0xf0] }
 0x2d4   : > { %3055 = vmatpush.bf16.msrb.mxu1 %v2268_v35  ;;  %3107 = vmatpush.bf16.msrb.mxu2 %v2273_v14  ;;  %v6467_v35 = vld [vmem:[#allocation61_spill] sm:$0xff] }
 0x2d5   : > { %v6468_v14 = vld [vmem:[#allocation29_spill] sm:$0xff] }
 0x2d6   : > { %v5912_v63 = vpop.f32.mrf.mxu3 }
 0x2d8   : > { %3056 = vmatpush.bf16.msrb.mxu1 %v2267_v46  ;;  %3108 = vmatpush.bf16.msrb.mxu2 %v2272_v51  ;;  %v3892_v46 = vld [vmem:[%s6284_s3 + $0x150] sm:$0xf] }
 0x2d9   : > { %v3893_v34 = vor.u32 %v4084_v24, %v3892_v46  ;;  %v3774_v46 = vld [vmem:[%s6284_s3 + $0x78] sm:$0xf0] }
 0x2db   : > { %2919 = vmatmul.bf16.gmra.mxu1 %v3761_v20  ;;  %3017 = vmatmul.bf16.gmra.mxu3 %v3769_v19  ;;  %v3897_v20 = vor.u32 %v4080_v62, %v3894_v15  ;;  %v3924_v19 = vld [vmem:[%s6284_s3 + $0x190] sm:$0xf] }
 0x2dc   : > { %3057 = vmatpush.bf16.msrb.mxu1 %v2266_v22  ;;  %3109 = vmatpush.bf16.msrb.mxu2 %v2271_v0  ;;  %v3889_v0 = vor.u32 %v4079_v7, %v3886_v58  ;;  %v3925_v40 = vor.u32 %v4092_v8, %v3924_v19  ;;  %v6473_v15 = vld [vmem:[#allocation57_spill] sm:$0xff] }
 0x2de   : > { %v2871_v23 = vpop.f32.mrf.mxu3 }
 0x2df   : > { %v5922_v5 = vadd.f32 %v2871_v23, %v6464_v18  ;;  %2973 = vmatmul.bf16.gmra.mxu2 %v3797_v16  ;;  %v4087_v18 = vld [vmem:[%s6284_s3 + $0x18c] sm:$0xf] }
 0x2e0   : > { %3058 = vmatpush.bf16.msrb.mxu1 %v6463_v13  ;;  %v6470_v13 = vld [vmem:[#allocation47_spill] sm:$0xff] }
 0x2e4   : > { %3059 = vmatpush.bf16.msrb.mxu1 %v6465_v59  ;;  %v3918_v59 = vld [vmem:[%s6284_s3 + $0x1a8] sm:$0xf0] }
 0x2e5   : > { %v3921_v11 = vor.u32 %v4087_v18, %v3918_v59  ;;  %v4053_v59 = vld [vmem:[%s6284_s3 + $0x74] sm:$0xf0] }
 0x2e6   : > { %v5938_v42 = vpop.f32.mrf.mxu3 }
 0x2e8   : > { %3060 = vmatpush.bf16.msrb.mxu1 %v6466_v43  ;;  %v3929_v43 = vor.u32 %v4088_v17, %v3926_v10 }
 0x2eb   : > { %2924 = vmatmul.bf16.gmra.mxu1 %v3793_v3  ;;  %3022 = vmatmul.bf16.gmra.mxu3 %v3801_v2  ;;  %v3956_v3 = vld [vmem:[%s6284_s3 + $0x1d0] sm:$0xf] }
 0x2ec   : > { %v4100_v2 = vld [vmem:[%s6284_s3 + $0x1ec] sm:$0xf0] }
 0x2ed   : > { %v3957_v52 = vor.u32 %v4100_v2, %v3956_v3  ;;  %v3806_v3 = vld [vmem:[%s6284_s3 + $0xb8] sm:$0xf0] }
 0x2ee   : > { %v2876_v25 = vpop.f32.mrf.mxu3 }
 0x2ef   : > { %v5947_v38 = vadd.f32 %v2876_v25, %v6467_v35  ;;  %2978 = vmatmul.bf16.gmra.mxu2 %v3829_v53  ;;  %v4095_v25 = vld [vmem:[%s6284_s3 + $0x1cc] sm:$0xf] }
 0x2f0   : > { %v3950_v35 = vld [vmem:[%s6284_s3 + $0x1e8] sm:$0xf0] }
 0x2f6   : > { %v5961_v60 = vpop.f32.mrf.mxu3 }
 0x2fb   : > { %2929 = vmatmul.bf16.gmra.mxu1 %v3825_v4  ;;  %3027 = vmatmul.bf16.gmra.mxu3 %v3833_v55  ;;  %v4041_v4 = vld [vmem:[%s6284_s3 + $0x1c] sm:$0xf] }
 0x2fc   : > { %v3742_v55 = vld [vmem:[%s6284_s3 + $0x38] sm:$0xf0] }
 0x2fd   : > { %v3745_v30 = vor.u32 %v4041_v4, %v3742_v55 }
 0x2fe   : > { %v2881_v28 = vpop.f32.mrf.mxu3 }
 0x2ff   : > { %v5970_v50 = vadd.f32 %v2881_v28, %v6468_v14  ;;  %2983 = vmatmul.bf16.gmra.mxu2 %v3861_v56  ;;  %v6066_v14 = vpop.f32.mrf.mxu1 }
 0x306   : > { %v5984_v26 = vpop.f32.mrf.mxu3 }
 0x30b   : > { %2934 = vmatmul.bf16.gmra.mxu1 %v3857_v6  ;;  %3032 = vmatmul.bf16.gmra.mxu3 %v3865_v39  ;;  %v3741_v6 = vor.u32 %v4045_v54, %v3740_v27 }
 0x30e   : > { %v2886_v51 = vpop.f32.mrf.mxu3 }
 0x30f   : > { %v5993_v48 = vadd.f32 %v2886_v51, %v6469_v47  ;;  %2988 = vmatmul.bf16.gmra.mxu2 %v3893_v34  ;;  %v6471_v51 = vld [vmem:[#allocation60_spill] sm:$0xff]  ;;  %v6472_v47 = vld [vmem:[#allocation9_spill] sm:$0xff] }
 0x310   : > { %v2771_v7 = vadd.f32 %v6472_v47, %v6471_v51 }
 0x316   : > { %v6007_v22 = vpop.f32.mrf.mxu3 }
 0x31b   : > { %2939 = vmatmul.bf16.gmra.mxu1 %v3889_v0  ;;  %3037 = vmatmul.bf16.gmra.mxu3 %v3897_v20  ;;  %v2820_v0 = vadd.f32 %v6473_v15, %v2771_v7  ;;  %v6477_v7 = vld [vmem:[#allocation51_spill] sm:$0xff] }
 0x31d   : > { %v2869_v19 = vadd.f32 %v5912_v63, %v2820_v0 }
 0x31e   : > { %v2891_v16 = vpop.f32.mrf.mxu3 }
 0x31f   : > { %v6016_v23 = vadd.f32 %v2891_v16, %v6470_v13  ;;  %2993 = vmatmul.bf16.gmra.mxu2 %v3925_v40 }
 0x326   : > { %v6030_v21 = vpop.f32.mrf.mxu3 }
 0x32b   : > { %2944 = vmatmul.bf16.gmra.mxu1 %v3921_v11  ;;  %3042 = vmatmul.bf16.gmra.mxu3 %v3929_v43  ;;  %v4057_v43 = vld [vmem:[%s6284_s3 + $0x9c] sm:$0xf] }
 0x32c   : > { %v3809_v37 = vor.u32 %v4057_v43, %v3806_v3  ;;  %v3870_v3 = vld [vmem:[%s6284_s3 + $0x138] sm:$0xf0] }
 0x32e   : > { %v2896_v57 = vpop.f32.mrf.mxu3 }
 0x32f   : > { %v6039_v53 = vadd.f32 %v2896_v57, %v5800_v36  ;;  %2998 = vmatmul.bf16.gmra.mxu2 %v3957_v52  ;;  %v3953_v36 = vor.u32 %v4095_v25, %v3950_v35  ;;  %v6474_v57 = vld [vmem:[#allocation15_spill] sm:$0xff]  ;;  %v6475_v25 = vld [vmem:[#allocation10_spill] sm:$0xff] }
 0x330   : > { %v2776_v35 = vadd.f32 %v6475_v25, %v6474_v57  ;;  %v6480_v57 = vld [vmem:[#allocation52_spill] sm:$0xff]  ;;  %v6481_v25 = vld [vmem:[#allocation59_spill] sm:$0xff] }
 0x336   : > { %v6053_v32 = vpop.f32.mrf.mxu3 }
 0x33b   : > { %2949 = vmatmul.bf16.gmra.mxu1 %v3953_v36  ;;  %3047 = vmatmul.bf16.gmra.mxu3 %v3961_v44  ;;  %v6476_v36 = vld [vmem:[#allocation54_spill] sm:$0xff] }
 0x33c   : > { %v2825_v44 = vadd.f32 %v6476_v36, %v2776_v35  ;;  %v2786_v35 = vadd.f32 %v6481_v25, %v6480_v57  ;;  %v6482_v36 = vld [vmem:[#allocation55_spill] sm:$0xff] }
 0x33e   : > { %v2901_v56 = vpop.f32.mrf.mxu3  ;;  %v2874_v55 = vadd.f32 %v5938_v42, %v2825_v44  ;;  %v2835_v44 = vadd.f32 %v6482_v36, %v2786_v35 }
 0x33f   : > { %v6064_v28 = vadd.f32 %v2901_v56, %v5842_v33  ;;  %3110 = vmatmul.bf16.vlgmr.msrb.gmra.mxu2 %v3745_v30  ;;  %v4049_v33 = vld [vmem:[%s6284_s3 + $0x5c] sm:$0xf] }
 0x340   : > { %v3777_v62 = vor.u32 %v4049_v33, %v3774_v46 }
 0x342   : > { %v2964_v9 = vpop.f32.mrf.mxu2 }
 0x346   : > { %v6074_v1 = vpop.f32.mrf.mxu3 }
 0x348   : > { %v2915_v39 = vpop.f32.mrf.mxu1 }
 0x349   : > { %v2916_v24 = vadd.f32 %v2915_v39, %v5898_v29  ;;  %v3772_v29 = vld [vmem:[%s6284_s3 + $0x58] sm:$0xf] }
 0x34a   : > { %v2966_v34 = vpop.f32.mrf.mxu2  ;;  %v3773_v11 = vor.u32 %v4053_v59, %v3772_v29 }
 0x34b   : > { %v2965_v58 = vadd.f32 %v2964_v9, %v2916_v24  ;;  %3061 = vmatmul.bf16.vlgmr.msrb.gmra.mxu1 %v3741_v6  ;;  %v4061_v6 = vld [vmem:[%s6284_s3 + $0xb4] sm:$0xf0]  ;;  %v4065_v24 = vld [vmem:[%s6284_s3 + $0xdc] sm:$0xf] }
 0x34e   : > { %v3013_v20 = vpop.f32.mrf.mxu3 }
 0x34f   : > { %v6087_v8 = vadd.f32 %v3013_v20, %v2965_v58  ;;  %3115 = vmatmul.bf16.gmra.mxu2 %v3777_v62  ;;  %v6478_v58 = vld [vmem:[#allocation7_spill] sm:$0xff]  ;;  %v6479_v20 = vld [vmem:[#allocation58_spill] sm:$0xff] }
 0x350   : > { %v2917_v40 = vpop.f32.mrf.mxu1  ;;  %v2781_v62 = vadd.f32 %v6478_v58, %v6477_v7  ;;  %v6485_v58 = vld [vmem:[#allocation53_spill] sm:$0xff] }
 0x351   : > { %v2918_v16 = vadd.f32 %v2917_v40, %v2869_v19 }
 0x352   : > { %v2969_v13 = vpop.f32.mrf.mxu2  ;;  %v2830_v19 = vadd.f32 %v6479_v20, %v2781_v62 }
 0x353   : > { %v2967_v18 = vadd.f32 %v2966_v34, %v2918_v16  ;;  %v3838_v34 = vld [vmem:[%s6284_s3 + $0xf8] sm:$0xf0] }
 0x354   : > { %v3841_v0 = vor.u32 %v4065_v24, %v3838_v34  ;;  %v2879_v16 = vadd.f32 %v5961_v60, %v2830_v19  ;;  %v4073_v60 = vld [vmem:[%s6284_s3 + $0x11c] sm:$0xf]  ;;  %v6483_v24 = vld [vmem:[#allocation49_spill] sm:$0xff]  ;;  %v6484_v34 = vld [vmem:[#allocation48_spill] sm:$0xff] }
 0x356   : > { %v3015_v17 = vpop.f32.mrf.mxu3 }
 0x357   : > { %v6095_v10 = vadd.f32 %v3015_v17, %v2967_v18 }
 0x358   : > { %v2920_v63 = vpop.f32.mrf.mxu1 }
 0x359   : > { %v2921_v2 = vadd.f32 %v2920_v63, %v5922_v5  ;;  %v3804_v5 = vld [vmem:[%s6284_s3 + $0x98] sm:$0xf] }
 0x35a   : > { %v2971_v52 = vpop.f32.mrf.mxu2  ;;  %v3805_v46 = vor.u32 %v4061_v6, %v3804_v5 }
 0x35b   : > { %v2970_v45 = vadd.f32 %v2969_v13, %v2921_v2  ;;  %3066 = vmatmul.bf16.gmra.mxu1 %v3773_v11  ;;  %v4069_v11 = vld [vmem:[%s6284_s3 + $0xf4] sm:$0xf0] }
 0x35e   : > { %v3018_v4 = vpop.f32.mrf.mxu3 }
 0x35f   : > { %v6108_v30 = vadd.f32 %v3018_v4, %v2970_v45  ;;  %3120 = vmatmul.bf16.gmra.mxu2 %v3809_v37  ;;  %v3873_v37 = vor.u32 %v4073_v60, %v3870_v3  ;;  %v2884_v4 = vadd.f32 %v5984_v26, %v2835_v44  ;;  %v4081_v26 = vld [vmem:[%s6284_s3 + $0x15c] sm:$0xf] }
 0x360   : > { %v2922_v56 = vpop.f32.mrf.mxu1 }
 0x361   : > { %v2923_v9 = vadd.f32 %v2922_v56, %v2874_v55 }
 0x362   : > { %v2974_v27 = vpop.f32.mrf.mxu2 }
 0x363   : > { %v2972_v54 = vadd.f32 %v2971_v52, %v2923_v9 }
 0x366   : > { %v3020_v39 = vpop.f32.mrf.mxu3 }
 0x367   : > { %v6116_v33 = vadd.f32 %v3020_v39, %v2972_v54  ;;  %v4077_v54 = vld [vmem:[%s6284_s3 + $0x134] sm:$0xf0]  ;;  %v3902_v39 = vld [vmem:[%s6284_s3 + $0x178] sm:$0xf0] }
 0x368   : > { %v2925_v42 = vpop.f32.mrf.mxu1  ;;  %v3905_v7 = vor.u32 %v4081_v26, %v3902_v39 }
 0x369   : > { %v2926_v51 = vadd.f32 %v2925_v42, %v5947_v38  ;;  %v3836_v38 = vld [vmem:[%s6284_s3 + $0xd8] sm:$0xf] }
 0x36a   : > { %v2976_v47 = vpop.f32.mrf.mxu2  ;;  %v3837_v63 = vor.u32 %v4069_v11, %v3836_v38 }
 0x36b   : > { %v2975_v15 = vadd.f32 %v2974_v27, %v2926_v51  ;;  %3071 = vmatmul.bf16.gmra.mxu1 %v3805_v46  ;;  %v2791_v51 = vadd.f32 %v6484_v34, %v6483_v24 }
 0x36d   : > { %v2840_v62 = vadd.f32 %v6485_v58, %v2791_v51  ;;  %v2437_v51 = vpop.permute.xlu2 %2436 }
 0x36e   : > { %v3023_v40 = vpop.f32.mrf.mxu3 }
 0x36f   : > { %v6129_v13 = vadd.f32 %v3023_v40, %v2975_v15  ;;  %3125 = vmatmul.bf16.gmra.mxu2 %v3841_v0  ;;  %v2889_v15 = vadd.f32 %v6007_v22, %v2840_v62  ;;  %v4089_v22 = vld [vmem:[%s6284_s3 + $0x19c] sm:$0xf] }
 0x370   : > { %v2927_v18 = vpop.f32.mrf.mxu1 }
 0x371   : > { %v2928_v29 = vadd.f32 %v2927_v18, %v2879_v16  ;;  %v4085_v16 = vld [vmem:[%s6284_s3 + $0x174] sm:$0xf0] }
 0x372   : > { %v2979_v59 = vpop.f32.mrf.mxu2 }
 0x373   : > { %v6131_v17 = vadd.f32 %v2976_v47, %v2928_v29 }
 0x378   : > { %v2930_v43 = vpop.f32.mrf.mxu1 }
 0x379   : > { %v2931_v2 = vadd.f32 %v2930_v43, %v5970_v50  ;;  %v3868_v50 = vld [vmem:[%s6284_s3 + $0x118] sm:$0xf] }
 0x37a   : > { %v2981_v52 = vpop.f32.mrf.mxu2  ;;  %v3869_v5 = vor.u32 %v4077_v54, %v3868_v50 }
 0x37b   : > { %v6148_v45 = vadd.f32 %v2979_v59, %v2931_v2  ;;  %3076 = vmatmul.bf16.gmra.mxu1 %v3837_v63  ;;  %v3934_v59 = vld [vmem:[%s6284_s3 + $0x1b8] sm:$0xf0]  ;;  %v6486_v63 = vld [vmem:[#allocation28_spill] sm:$0xff] }
 0x37c   : > { %v2796_v43 = vadd.f32 %v6486_v63, %v5806_v49  ;;  %v3937_v3 = vor.u32 %v4089_v22, %v3934_v59  ;;  %v4093_v49 = vld [vmem:[%s6284_s3 + $0x1b4] sm:$0xf0] }
 0x37e   : > { %v2845_v2 = vadd.f32 %v5793_v12, %v2796_v43  ;;  %v4097_v12 = vld [vmem:[%s6284_s3 + $0x1dc] sm:$0xf] }
 0x37f   : > { %3130 = vmatmul.bf16.gmra.mxu2 %v3873_v37 }
 0x380   : > { %v2932_v55 = vpop.f32.mrf.mxu1 }
 0x381   : > { %v2933_v56 = vadd.f32 %v2932_v55, %v2884_v4  ;;  %v2427_v55 = vpop.permute.xlu0 %2426 }
 0x382   : > { %v2984_v9 = vpop.f32.mrf.mxu2 }
 0x383   : > { %v6152_v27 = vadd.f32 %v2981_v52, %v2933_v56  ;;  %v2894_v52 = vadd.f32 %v6030_v21, %v2845_v2  ;;  %v3966_v21 = vld [vmem:[%s6284_s3 + $0x1f8] sm:$0xf0]  ;;  %v3025_v2 = vpop.f32.mrf.mxu3 }
 0x384   : > { %v3969_v54 = vor.u32 %v4097_v12, %v3966_v21 }
 0x388   : > { %v2935_v6 = vpop.f32.mrf.mxu1 }
 0x389   : > { %v2936_v46 = vadd.f32 %v2935_v6, %v5993_v48  ;;  %v3900_v48 = vld [vmem:[%s6284_s3 + $0x158] sm:$0xf]  ;;  %v3186_v43 = vpop.permute.xlu0 %3185 }
 0x38a   : > { %v2986_v42 = vpop.f32.mrf.mxu2  ;;  %v3901_v18 = vor.u32 %v4085_v16, %v3900_v48 }
 0x38b   : > { %v6169_v47 = vadd.f32 %v2984_v9, %v2936_v46  ;;  %3081 = vmatmul.bf16.gmra.mxu1 %v3869_v5  ;;  %v2801_v9 = vadd.f32 %v5802_v41, %v2427_v55  ;;  %v4101_v41 = vld [vmem:[%s6284_s3 + $0x1f4] sm:$0xf0]  ;;  %v3028_v21 = vpop.f32.mrf.mxu3 }
 0x38d   : > { %v2850_v5 = vadd.f32 %v5819_v61, %v2801_v9 }
 0x38f   : > { %3135 = vmatmul.bf16.gmra.mxu2 %v3905_v7  ;;  %v2899_v6 = vadd.f32 %v6053_v32, %v2850_v5  ;;  %v2806_v7 = vadd.f32 %v6066_v14, %v2437_v51 }
 0x390   : > { %v2937_v0 = vpop.f32.mrf.mxu1 }
 0x391   : > { %v2938_v20 = vadd.f32 %v2937_v0, %v2889_v15  ;;  %v2855_v62 = vadd.f32 %v6061_v31, %v2806_v7  ;;  %v3191_v31 = vpop.permute.xlu1 %3190  ;;  %v3201_v9 = vpop.permute.xlu0 %3200 }
 0x392   : > { %v2989_v19 = vpop.f32.mrf.mxu2 }
 0x393   : > { %v6173_v40 = vadd.f32 %v2986_v42, %v2938_v20  ;;  %v2904_v15 = vadd.f32 %v6074_v1, %v2855_v62 }
 0x398   : > { %v2940_v29 = vpop.f32.mrf.mxu1 }
 0x399   : > { %v2941_v38 = vadd.f32 %v2940_v29, %v6016_v23  ;;  %v3932_v23 = vld [vmem:[%s6284_s3 + $0x198] sm:$0xf] }
 0x39a   : > { %v2991_v11 = vpop.f32.mrf.mxu2  ;;  %v3933_v36 = vor.u32 %v4093_v49, %v3932_v23  ;;  %v3196_v49 = vpop.permute.xlu2 %3195 }
 0x39b   : > { %v6190_v60 = vadd.f32 %v2989_v19, %v2941_v38  ;;  %3086 = vmatmul.bf16.gmra.mxu1 %v3901_v18 }
 0x39f   : > { %3140 = vmatmul.bf16.gmra.mxu2 %v3937_v3 }
 0x3a0   : > { %v2942_v57 = vpop.f32.mrf.mxu1 }
 0x3a1   : > { %v2943_v25 = vadd.f32 %v2942_v57, %v2894_v52 }
 0x3a2   : > { %v2994_v35 = vpop.f32.mrf.mxu2 }
 0x3a3   : > { %v6194_v37 = vadd.f32 %v2991_v11, %v2943_v25 }
 0x3a8   : > { %v2945_v44 = vpop.f32.mrf.mxu1 }
 0x3a9   : > { %v2946_v4 = vadd.f32 %v2945_v44, %v6039_v53  ;;  %v3964_v53 = vld [vmem:[%s6284_s3 + $0x1d8] sm:$0xf] }
 0x3aa   : > { %v2996_v56 = vpop.f32.mrf.mxu2  ;;  %v3965_v24 = vor.u32 %v4101_v41, %v3964_v53  ;;  %v3206_v41 = vpop.permute.xlu1 %3205 }
 0x3ab   : > { %v6210_v50 = vadd.f32 %v2994_v35, %v2946_v4  ;;  %3091 = vmatmul.bf16.gmra.mxu1 %v3933_v36 }
 0x3af   : > { %3145 = vmatmul.bf16.gmra.mxu2 %v3969_v54 }
 0x3b0   : > { %v2947_v26 = vpop.f32.mrf.mxu1 }
 0x3b1   : > { %v2948_v39 = vadd.f32 %v2947_v26, %v2899_v6 }
 0x3b2   : > { %v2999_v46 = vpop.f32.mrf.mxu2 }
 0x3b3   : > { %v6214_v42 = vadd.f32 %v2996_v56, %v2948_v39 }
 0x3b8   : > { %v2950_v34 = vpop.f32.mrf.mxu1 }
 0x3b9   : > { %v2951_v61 = vadd.f32 %v2950_v34, %v6064_v28 }
 0x3ba   : > { %v3001_v32 = vpop.f32.mrf.mxu2 }
 0x3bb   : > { %v6224_v58 = vadd.f32 %v2999_v46, %v2951_v61  ;;  %3096 = vmatmul.bf16.gmra.mxu1 %v3965_v24  ;;  %v3030_v46 = vpop.f32.mrf.mxu3  ;;  %v3026_v24 = vadd.f32 %v3025_v2, %v6131_v17  ;;  %v3221_v2 = vpop.permute.xlu1 %3220 }
 0x3bc   : > { %v3031_v17 = vadd.f32 %v3030_v46, %v6152_v27 }
 0x3c0   : > { %v2952_v0 = vpop.f32.mrf.mxu1 }
 0x3c1   : > { %v2953_v20 = vadd.f32 %v2952_v0, %v2904_v15  ;;  %v3211_v15 = vpop.permute.xlu2 %3210 }
 0x3c2   : > { %v3111_v19 = vpop.f32.mrf.mxu2 }
 0x3c3   : > { %v6228_v48 = vadd.f32 %v3001_v32, %v2953_v20  ;;  %v3033_v0 = vpop.f32.mrf.mxu3  ;;  %v3029_v20 = vadd.f32 %v3028_v21, %v6148_v45 }
 0x3c4   : > { %v3034_v45 = vadd.f32 %v3033_v0, %v6169_v47 }
 0x3c8   : > { %v3062_v16 = vpop.f32.mrf.mxu1 }
 0x3c9   : > { %v3063_v18 = vadd.f32 %v3062_v16, %v6087_v8  ;;  %v3226_v27 = vpop.permute.xlu2 %3225 }
 0x3ca   : > { %v3113_v28 = vpop.f32.mrf.mxu2 }
 0x3cb   : > { %v3112_v29 = vadd.f32 %v3111_v19, %v3063_v18 }
 0x3cd   : > { %v3151_v38 = vmax.f32 %v3112_v29, 0.0 }
 0x3cf   : > { %v3263_v1 = vmul.f32 %v3186_v43, %v3151_v38  ;;  %v3035_v38 = vpop.f32.mrf.mxu3 }
 0x3d0   : > { %v3064_v22 = vpop.f32.mrf.mxu1 }
 0x3d1   : > { %v3065_v14 = vadd.f32 %v3064_v22, %v6095_v10  ;;  %v3241_v0 = vpop.permute.xlu2 %3240 }
 0x3d2   : > { %v3116_v59 = vpop.f32.mrf.mxu2 }
 0x3d3   : > { %v3114_v11 = vadd.f32 %v3113_v28, %v3065_v14  ;;  %v3216_v14 = vpop.permute.xlu0 %3215 }
 0x3d5   : > { %v3152_v63 = vmax.f32 %v3114_v11, 0.0 }
 0x3d7   : > { %v3264_v3 = vmul.f32 %v3191_v31, %v3152_v63 }
 0x3d8   : > { %v3067_v52 = vpop.f32.mrf.mxu1 }
 0x3d9   : > { %v3279_v57 = vadd.f32 %v3264_v3, %v3263_v1  ;;  %v3068_v25 = vadd.f32 %v3067_v52, %v6108_v30 }
 0x3da   : > { %v3118_v35 = vpop.f32.mrf.mxu2 }
 0x3db   : > { %v3117_v8 = vadd.f32 %v3116_v59, %v3068_v25  ;;  %v3231_v47 = vpop.permute.xlu0 %3230 }
 0x3dd   : > { %v3153_v23 = vmax.f32 %v3117_v8, 0.0  ;;  %v3038_v8 = vpop.f32.mrf.mxu3 }
 0x3df   : > { %v3265_v36 = vmul.f32 %v3196_v49, %v3153_v23 }
 0x3e0   : > { %v3069_v44 = vpop.f32.mrf.mxu1 }
 0x3e1   : > { %v3280_v10 = vadd.f32 %v3279_v57, %v3265_v36  ;;  %v3070_v12 = vadd.f32 %v3069_v44, %v6116_v33  ;;  %v3036_v44 = vadd.f32 %v3035_v38, %v6173_v40 }
 0x3e2   : > { %v3121_v4 = vpop.f32.mrf.mxu2 }
 0x3e3   : > { %v3119_v55 = vadd.f32 %v3118_v35, %v3070_v12 }
 0x3e5   : > { %v3154_v56 = vmax.f32 %v3119_v55, 0.0 }
 0x3e7   : > { %v3266_v54 = vmul.f32 %v3201_v9, %v3154_v56  ;;  %v3040_v9 = vpop.f32.mrf.mxu3 }
 0x3e8   : > { %v3072_v5 = vpop.f32.mrf.mxu1 }
 0x3e9   : > { %v3281_v6 = vadd.f32 %v3280_v10, %v3266_v54  ;;  %v3073_v26 = vadd.f32 %v3072_v5, %v6129_v13  ;;  %v3039_v5 = vadd.f32 %v3038_v8, %v6190_v60 }
 0x3ea   : > { %v3123_v30 = vpop.f32.mrf.mxu2 }
 0x3eb   : > { %v3122_v39 = vadd.f32 %v3121_v4, %v3073_v26 }
 0x3ed   : > { %v3155_v53 = vmax.f32 %v3122_v39, 0.0 }
 0x3ef   : > { %v3267_v34 = vmul.f32 %v3206_v41, %v3155_v53  ;;  %v3043_v40 = vpop.f32.mrf.mxu3 }
 0x3f0   : > { %v3074_v61 = vpop.f32.mrf.mxu1  ;;  %v3044_v60 = vadd.f32 %v3043_v40, %v6210_v50 }
 0x3f1   : > { %v3282_v33 = vadd.f32 %v3281_v6, %v3267_v34  ;;  %v3075_v51 = vadd.f32 %v3074_v61, %v3026_v24  ;;  %v3236_v24 = vpop.permute.xlu1 %3235  ;;  %v3041_v34 = vadd.f32 %v3040_v9, %v6194_v37 }
 0x3f2   : > { %v3126_v32 = vpop.f32.mrf.mxu2 }
 0x3f3   : > { %v3124_v7 = vadd.f32 %v3123_v30, %v3075_v51 }
 0x3f5   : > { %v3156_v62 = vmax.f32 %v3124_v7, 0.0 }
 0x3f7   : > { %v3268_v19 = vmul.f32 %v3211_v15, %v3156_v62 }
 0x3f8   : > { %v3077_v13 = vpop.f32.mrf.mxu1 }
 0x3f9   : > { %v3283_v16 = vadd.f32 %v3282_v33, %v3268_v19  ;;  %v3078_v18 = vadd.f32 %v3077_v13, %v3029_v20  ;;  %v3045_v19 = vpop.f32.mrf.mxu3 }
 0x3fa   : > { %v3128_v28 = vpop.f32.mrf.mxu2  ;;  %v3046_v37 = vadd.f32 %v3045_v19, %v6214_v42 }
 0x3fb   : > { %v3127_v29 = vadd.f32 %v3126_v32, %v3078_v18 }
 0x3fd   : > { %v3157_v22 = vmax.f32 %v3127_v29, 0.0 }
 0x3ff   : > { %v3269_v59 = vmul.f32 %v3216_v14, %v3157_v22  ;;  %v3246_v22 = vpop.permute.xlu0 %3245 }
 0x400   : > { %v3079_v11 = vpop.f32.mrf.mxu1 }
 0x401   : > { %v3284_v63 = vadd.f32 %v3283_v16, %v3269_v59  ;;  %v3080_v31 = vadd.f32 %v3079_v11, %v3031_v17 }
 0x402   : > { %v3131_v43 = vpop.f32.mrf.mxu2 }
 0x403   : > { %v3129_v1 = vadd.f32 %v3128_v28, %v3080_v31 }
 0x405   : > { %v3158_v3 = vmax.f32 %v3129_v1, 0.0  ;;  %v3251_v1 = vpop.permute.xlu1 %3250 }
 0x407   : > { %v3270_v52 = vmul.f32 %v3221_v2, %v3158_v3 }
 0x408   : > { %v3082_v57 = vpop.f32.mrf.mxu1 }
 0x409   : > { %v3285_v25 = vadd.f32 %v3284_v63, %v3270_v52  ;;  %v3083_v35 = vadd.f32 %v3082_v57, %v3034_v45  ;;  %v3048_v63 = vpop.f32.mrf.mxu3 }
 0x40a   : > { %v3133_v23 = vpop.f32.mrf.mxu2  ;;  %v3049_v50 = vadd.f32 %v3048_v63, %v6224_v58 }
 0x40b   : > { %v3132_v49 = vadd.f32 %v3131_v43, %v3083_v35 }
 0x40d   : > { %v3159_v36 = vmax.f32 %v3132_v49, 0.0 }
 0x40f   : > { %v3271_v10 = vmul.f32 %v3226_v27, %v3159_v36 }
 0x410   : > { %v3084_v12 = vpop.f32.mrf.mxu1 }
 0x411   : > { %v3286_v21 = vadd.f32 %v3285_v25, %v3271_v10  ;;  %v3085_v4 = vadd.f32 %v3084_v12, %v3036_v44  ;;  %v3050_v35 = vpop.f32.mrf.mxu3 }
 0x412   : > { %v3136_v55 = vpop.f32.mrf.mxu2  ;;  %v3051_v42 = vadd.f32 %v3050_v35, %v6228_v48  ;;  %v3301_v48 = vstv %s3300_s10 }
 0x413   : > { %v3134_v56 = vadd.f32 %v3133_v23, %v3085_v4  ;;  %v3256_v23 = vpop.permute.xlu2 %3255 }
 0x415   : > { %v3160_v54 = vmax.f32 %v3134_v56, 0.0 }
 0x417   : > { %v3272_v6 = vmul.f32 %v3231_v47, %v3160_v54 }
 0x418   : > { %v3087_v26 = vpop.f32.mrf.mxu1 }
 0x419   : > { %v3287_v30 = vadd.f32 %v3286_v21, %v3272_v6  ;;  %v3088_v39 = vadd.f32 %v3087_v26, %v3039_v5  ;;  %v3261_v21 = vpop.permute.xlu0 %3260 }
 0x41a   : > { %v3138_v46 = vpop.f32.mrf.mxu2 }
 0x41b   : > { %v3137_v53 = vadd.f32 %v3136_v55, %v3088_v39 }
 0x41d   : > { %v3161_v41 = vmax.f32 %v3137_v53, 0.0 }
 0x41f   : > { %v3273_v61 = vmul.f32 %v3236_v24, %v3161_v41 }
 0x420   : > { %v3089_v33 = vpop.f32.mrf.mxu1 }
 0x421   : > { %v3288_v51 = vadd.f32 %v3287_v30, %v3273_v61  ;;  %v3090_v32 = vadd.f32 %v3089_v33, %v3041_v34 }
 0x422   : > { %v3141_v62 = vpop.f32.mrf.mxu2 }
 0x423   : > { %v3139_v7 = vadd.f32 %v3138_v46, %v3090_v32 }
 0x425   : > { %v3162_v15 = vmax.f32 %v3139_v7, 0.0 }
 0x427   : > { %v3274_v20 = vmul.f32 %v3241_v0, %v3162_v15 }
 0x428   : > { %v3092_v13 = vpop.f32.mrf.mxu1 }
 0x429   : > { %v3289_v16 = vadd.f32 %v3288_v51, %v3274_v20  ;;  %v3093_v18 = vadd.f32 %v3092_v13, %v3044_v60 }
 0x42a   : > { %v3143_v14 = vpop.f32.mrf.mxu2 }
 0x42b   : > { %v3142_v28 = vadd.f32 %v3141_v62, %v3093_v18 }
 0x42d   : > { %v3163_v29 = vmax.f32 %v3142_v28, 0.0 }
 0x42f   : > { %v3275_v17 = vmul.f32 %v3246_v22, %v3163_v29 }
 0x430   : > { %v3094_v59 = vpop.f32.mrf.mxu1 }
 0x431   : > { %v3290_v38 = vadd.f32 %v3289_v16, %v3275_v17  ;;  %v3095_v11 = vadd.f32 %v3094_v59, %v3046_v37 }
 0x432   : > { %v3146_v45 = vpop.f32.mrf.mxu2 }
 0x433   : > { %v3144_v31 = vadd.f32 %v3143_v14, %v3095_v11 }
 0x435   : > { %v3164_v43 = vmax.f32 %v3144_v31, 0.0 }
 0x437   : > { %v3276_v3 = vmul.f32 %v3251_v1, %v3164_v43 }
 0x438   : > { %v3097_v2 = vpop.f32.mrf.mxu1 }
 0x439   : > { %v3291_v52 = vadd.f32 %v3290_v38, %v3276_v3  ;;  %v3098_v57 = vadd.f32 %v3097_v2, %v3049_v50 }
 0x43a   : > { %v3148_v10 = vpop.f32.mrf.mxu2 }
 0x43b   : > { %v3147_v25 = vadd.f32 %v3146_v45, %v3098_v57 }
 0x43d   : > { %v3165_v8 = vmax.f32 %v3147_v25, 0.0 }
 0x43f   : > { %v3277_v49 = vmul.f32 %v3256_v23, %v3165_v8 }
 0x440   : > { %v3099_v36 = vpop.f32.mrf.mxu1 }
 0x441   : > { %v3292_v27 = vadd.f32 %v3291_v52, %v3277_v49  ;;  %v3100_v44 = vadd.f32 %v3099_v36, %v3051_v42 }
 0x443   : > { %v3149_v12 = vadd.f32 %v3148_v10, %v3100_v44 }
 0x445   : > { %v3166_v58 = vmax.f32 %v3149_v12, 0.0 }
 0x447   : > { %v3278_v4 = vmul.f32 %v3261_v21, %v3166_v58 }
 0x449   : > { %v3293_v55 = vadd.f32 %v3292_v27, %v3278_v4 }
 0x44b   : > { %v3294_v56 = vrot.slane %v3293_v55, 4 }
 0x44d   : > { %v3295_v9 = vadd.f32 %v3294_v56, %v3293_v55 }
 0x44f   : > { %v3296_v54 = vrot.slane %v3295_v9, 2 }
 0x451   : > { %v3297_v47 = vadd.f32 %v3296_v54, %v3295_v9 }
 0x453   : > { %v3298_v5 = vrot.slane %v3297_v47, 1 }
 0x455   : > { %v3299_v6 = vadd.f32 %v3298_v5, %v3297_v47 }
 0x457   : > { %v3302_v26 = vadd.f32 %v3301_v48, %v3299_v6 }
 0x459   : > { %v3303_v30 = vmax.f32 %v3302_v26, 0.0 }
 0x45b   : > { %3304 = vst [vmem:[%s331_s17] sm:$0x1] %v3303_v30 }
 0x45c   : > { %4178 = shalt.err (!%p4175_p5)
}
 0x45d   : > { %4108 = dma.vmem_to_hbm [thread:$0]  (%p4297_p6), %s3317_s18, 16, %s3319_s19, %s3306_s20  }
 0x45e PF: > { %s3330_s9 = sand.u32 1, %s4201_s26   ;;  %p4111_p7 = pnand %p3381_p9, %p4301_p8 }
 0x45f   : > { %s3331_s10 = scalar_lea.sflag [#allocation5], %s3330_s9 }
 0x460   : > { %p4112_p10 = pneg %p4111_p7 }
 0x462   : > { %4196 = dma.done.wait (%p4112_p10), %s3331_s10, 16  }
 0x463   : > { %4198 = vsyncadd (%p4112_p10), %s3331_s10, 4294967280  ;;  %p18_p11 = scmp.ge.s32.totalorder %s4282_s8, 4   ;;  %s6487_s26 = smov %s4205_s27 }
 0x464   : > { %s6488_s27 = smov %s4209_s28  ;;  %s6489_s28 = smov %s4295_s11 }
 0x465   : > { %s6490_s29 = smov %s4282_s8  ;;  %20 = sbr.rel (!%p18_p11) target bundleno = 5 (0x5), region = 129 }
 0x46a   :  { %3336 = vsyncpa [#allocation5], 1 }
 0x46b   :  { %3338 = vsyncpa [#allocation5 + $0x1], 1 }

</bundles_post_ra>
